<compile_context>
chip_gen: v7x
topology: tpu7x:2x2x1
jax: 0.10.0
libtpu: 0.0.40
codegen_flags: <defaults>
</compile_context>

<pallas_src>
import math

import jax
import jax.numpy as jnp
from jax.experimental import pallas as pl
from jax.experimental.pallas import tpu as pltpu

F32 = jnp.float32

# ---- model hyper-parameters -------------------------------------------------
HIDDEN = 32
NUM_HEADS = 2
HEAD_DIM = HIDDEN // NUM_HEADS
NUM_LAYERS = 2
INTERMEDIATE = 4 * HIDDEN
VOCAB = 100
MAX_POS = 64
TYPE_VOCAB = 2
LN_EPS = 1e-12
ATTN_SCALE = 1.0 / math.sqrt(HEAD_DIM)

# synthetic image encoder (stands in for VisualEncoder): 8x8 patch embedding
PATCH = 8
IMG_CH = 3
IMG_HIDDEN = 48            # img_encoder.module.out_dim
IMG_TOKEN_INTERVAL = 1     # default kwargs
IMG_TOKEN_TYPE = 0

_VMEM = pl.BlockSpec(memory_space=pltpu.MemorySpace.VMEM)


# ---- kernel 1: image patch projection (two fused matmuls) -------------------
def _img_proj_kernel(p_ref, pw_ref, pb_ref, iw_ref, ib_ref, o_ref):
    feats = jnp.dot(p_ref[...], pw_ref[...],
                    preferred_element_type=jnp.float32) + pb_ref[...]
    o_ref[...] = jnp.dot(feats, iw_ref[...],
                         preferred_element_type=jnp.float32) + ib_ref[...]


def pallas_img_proj(patches2d, pw, pb, iw, ib):
    M = patches2d.shape[0]
    return pl.pallas_call(
        _img_proj_kernel,
        out_shape=jax.ShapeDtypeStruct((M, HIDDEN), F32),
        in_specs=[_VMEM] * 5,
        out_specs=_VMEM,
    )(patches2d, pw, pb, iw, ib)


# ---- kernel 2: fused BERT encoder (emb LN + all layers + pooler) ------------
def _ln(x, g, b):
    mu = jnp.mean(x, axis=-1, keepdims=True)
    var = jnp.mean(jnp.square(x - mu), axis=-1, keepdims=True)
    return (x - mu) * jax.lax.rsqrt(var + LN_EPS) * g + b


def _encoder_kernel(x0_ref, mask_ref, sel_ref, eg_ref, eb_ref,
                    wqkv_ref, bqkv_ref, wo_ref, bo_ref, l1g_ref, l1b_ref,
                    wi_ref, bi_ref, wo2_ref, bo2_ref, l2g_ref, l2b_ref,
                    pw_ref, pb_ref,
                    enc_ref, pooled_ref, x_acc):
    l = pl.program_id(0)

    # embedding LayerNorm once, on the first layer step
    @pl.when(l == 0)
    def _():
        x_acc[...] = _ln(x0_ref[...], eg_ref[...], eb_ref[...])

    x = x_acc[...]                       # [B*S, H]  (resident in VMEM)
    mask2d = mask_ref[...]               # [B*S, B*S] additive mask

    # fused QKV projection
    qkv = jnp.dot(x, wqkv_ref[0], preferred_element_type=jnp.float32) + bqkv_ref[0]
    q = qkv[:, :HIDDEN]
    k = qkv[:, HIDDEN:2 * HIDDEN]
    v = qkv[:, 2 * HIDDEN:]

    # multi-head attention: full [B*S, B*S] scores with block-diagonal mask
    ctx_heads = []
    for h in range(NUM_HEADS):           # static unrolled loop (NUM_HEADS=2)
        sl = slice(h * HEAD_DIM, (h + 1) * HEAD_DIM)
        s = jnp.dot(q[:, sl], k[:, sl].T,
                    preferred_element_type=jnp.float32) * ATTN_SCALE
        s = s + mask2d
        s = s - jnp.max(s, axis=-1, keepdims=True)
        p = jnp.exp(s)
        p = p / jnp.sum(p, axis=-1, keepdims=True)
        ctx_heads.append(jnp.dot(p, v[:, sl],
                                 preferred_element_type=jnp.float32))
    ctx = jnp.concatenate(ctx_heads, axis=-1)       # [B*S, H]

    attn_out = jnp.dot(ctx, wo_ref[0],
                       preferred_element_type=jnp.float32) + bo_ref[0]
    x = _ln(attn_out + x, l1g_ref[0], l1b_ref[0])

    # FFN (intermediate stays in vregs/VMEM)
    inter = jnp.dot(x, wi_ref[0], preferred_element_type=jnp.float32) + bi_ref[0]
    # TODO(synk): HF BERT uses exact erf-GELU; tanh approximation used here.
    inter = jax.nn.gelu(inter, approximate=True)
    ffn = jnp.dot(inter, wo2_ref[0],
                  preferred_element_type=jnp.float32) + bo2_ref[0]
    x = _ln(ffn + x, l2g_ref[0], l2b_ref[0])
    x_acc[...] = x

    # final layer: write encoded sequence + pooled [CLS] (dense + tanh)
    @pl.when(l == pl.num_programs(0) - 1)
    def _():
        enc_ref[...] = x
        cls = jnp.dot(sel_ref[...], x, preferred_element_type=jnp.float32)
        pooled_ref[...] = jnp.tanh(
            jnp.dot(cls, pw_ref[...], preferred_element_type=jnp.float32)
            + pb_ref[...])


def pallas_encoder(x_sum2d, mask2d, sel, p):
    BS = x_sum2d.shape[0]
    B = sel.shape[0]

    def full2d(arr):
        return pl.BlockSpec(arr.shape, lambda l: (0, 0))

    def per_layer(arr):
        return pl.BlockSpec((1,) + arr.shape[1:], lambda l: (l, 0, 0))

    in_specs = [
        full2d(x_sum2d), full2d(mask2d), full2d(sel),
        full2d(p["emb_ln_g"]), full2d(p["emb_ln_b"]),
        per_layer(p["wqkv"]), per_layer(p["bqkv"]),
        per_layer(p["wo"]), per_layer(p["bo"]),
        per_layer(p["ln1_g"]), per_layer(p["ln1_b"]),
        per_layer(p["wi"]), per_layer(p["bi"]),
        per_layer(p["wo2"]), per_layer(p["bo2"]),
        per_layer(p["ln2_g"]), per_layer(p["ln2_b"]),
        full2d(p["pool_w"]), full2d(p["pool_b"]),
    ]
    out_specs = (
        pl.BlockSpec((BS, HIDDEN), lambda l: (0, 0)),
        pl.BlockSpec((B, HIDDEN), lambda l: (0, 0)),
    )
    encoded, pooled = pl.pallas_call(
        _encoder_kernel,
        out_shape=(jax.ShapeDtypeStruct((BS, HIDDEN), F32),
                   jax.ShapeDtypeStruct((B, HIDDEN), F32)),
        grid=(NUM_LAYERS,),
        in_specs=in_specs,
        out_specs=out_specs,
        scratch_shapes=[pltpu.VMEM((BS, HIDDEN), F32)],
        compiler_params=pltpu.CompilerParams(
            dimension_semantics=("arbitrary",)),
    )(x_sum2d, mask2d, sel,
      p["emb_ln_g"], p["emb_ln_b"],
      p["wqkv"], p["bqkv"], p["wo"], p["bo"], p["ln1_g"], p["ln1_b"],
      p["wi"], p["bi"], p["wo2"], p["bo2"], p["ln2_g"], p["ln2_b"],
      p["pool_w"], p["pool_b"])
    return encoded, pooled


# ---- model glue (gathers / mask construction in JAX, hot path in Pallas) ----
def _patchify(img_nchw):
    # TODO(synk): real VisualEncoder is a CNN backbone (e.g. ResNet); here a
    # deterministic patch-embedding linear projection stands in for it.
    B, C, H, W = img_nchw.shape
    nP = (H // PATCH) * (W // PATCH)
    patches = img_nchw.reshape(B, C, H // PATCH, PATCH, W // PATCH, PATCH)
    patches = patches.transpose(0, 2, 4, 1, 3, 5).reshape(B * nP, C * PATCH * PATCH)
    return patches, nP


@jax.jit
def _forward_jit(params, input_txt, attention_mask, segment, input_img,
                 cls_id, sep_id):
    B, T = input_txt.shape
    patches, nP = _patchify(input_img.astype(F32))

    # image features -> hidden projection (Pallas kernel 1)
    proj = pallas_img_proj(patches, params["patch_w"], params["patch_b"],
                           params["img_w"], params["img_b"])
    proj = proj.reshape(B, nP, HIDDEN)

    s_img = nP + 2                       # [CLS] <feats> [SEP]  (single image)
    S = s_img + T

    # image segment embedding sum
    cls_e = params["word_emb"][cls_id][:, None, :]
    sep_e = params["word_emb"][sep_id][:, None, :]
    img_tok = jnp.concatenate([cls_e, proj, sep_e], axis=1)        # [B,s_img,H]
    img_sum = (img_tok + params["pos_emb"][:s_img][None]
               + params["type_emb"][IMG_TOKEN_TYPE][None, None, :])

    # text segment embedding sum
    txt_sum = (params["word_emb"][input_txt]
               + params["pos_emb"][:T][None]
               + params["type_emb"][segment])

    x_sum = jnp.concatenate([img_sum, txt_sum], axis=1).reshape(B * S, HIDDEN)

    # additive attention mask: image segment fully attended + text mask,
    # folded with a block-diagonal batch mask (so all batches/heads share one
    # [B*S, B*S] score matrix; -1e4 => exp underflows to exactly 0).
    full_mask = jnp.concatenate(
        [jnp.ones((B, s_img), F32), attention_mask.astype(F32)], axis=1)
    key_ok = full_mask.reshape(B * S) > 0.5
    batch_id = jnp.repeat(jnp.arange(B), S)
    same_batch = batch_id[:, None] == batch_id[None, :]
    mask2d = jnp.where(same_batch & key_ok[None, :], 0.0, -10000.0).astype(F32)

    # selector matrix picking the [CLS] row of each batch element (for pooler)
    sel = jnp.zeros((B, B * S), F32).at[jnp.arange(B), jnp.arange(B) * S].set(1.0)

    encoded2d, pooled = pallas_encoder(x_sum, mask2d, sel, params)
    return pooled, encoded2d.reshape(B, S, HIDDEN)


def multimodal_bert_forward(params, input_txt, attention_mask, segment,
                            input_img, cls_id, sep_id):
    """Mirrors MultimodalBertEncoder.forward (img_mask=None, single image)."""
    B, T = input_txt.shape
    H_img, W_img = input_img.shape[-2:]
    nP = (H_img // PATCH) * (W_img // PATCH)
    num_images = 1
    image_seq_length = num_images * nP + (num_images - 1) * IMG_TOKEN_INTERVAL + 2

    pooled, encoded = _forward_jit(params, input_txt, attention_mask, segment,
                                   input_img, cls_id, sep_id)

    # output_rep_info is False by default -> rep_info only carries bert_embedding
    rep_info = {"bert_embedding": pooled}
    return pooled, rep_info, encoded, image_seq_length


# ---- deterministic parameter init (final shapes, f32, stacked per layer) ----
def init_params(key):
    def nrm(k, shape):
        return (jax.random.normal(k, shape, F32) * 0.02).astype(F32)

    keys = iter(jax.random.split(key, 32))
    p = {
        "word_emb": nrm(next(keys), (VOCAB, HIDDEN)),
        "pos_emb": nrm(next(keys), (MAX_POS, HIDDEN)),
        "type_emb": nrm(next(keys), (TYPE_VOCAB, HIDDEN)),
        "emb_ln_g": jnp.ones((1, HIDDEN), F32),
        "emb_ln_b": jnp.zeros((1, HIDDEN), F32),
        "patch_w": nrm(next(keys), (IMG_CH * PATCH * PATCH, IMG_HIDDEN)),
        "patch_b": jnp.zeros((1, IMG_HIDDEN), F32),
        "img_w": nrm(next(keys), (IMG_HIDDEN, HIDDEN)),
        "img_b": jnp.zeros((1, HIDDEN), F32),
        "pool_w": nrm(next(keys), (HIDDEN, HIDDEN)),
        "pool_b": jnp.zeros((1, HIDDEN), F32),
    }
    L = NUM_LAYERS
    p["wqkv"] = jnp.stack([nrm(next(keys), (HIDDEN, 3 * HIDDEN)) for _ in range(L)])
    p["bqkv"] = jnp.zeros((L, 1, 3 * HIDDEN), F32)
    p["wo"] = jnp.stack([nrm(next(keys), (HIDDEN, HIDDEN)) for _ in range(L)])
    p["bo"] = jnp.zeros((L, 1, HIDDEN), F32)
    p["ln1_g"] = jnp.ones((L, 1, HIDDEN), F32)
    p["ln1_b"] = jnp.zeros((L, 1, HIDDEN), F32)
    p["wi"] = jnp.stack([nrm(next(keys), (HIDDEN, INTERMEDIATE)) for _ in range(L)])
    p["bi"] = jnp.zeros((L, 1, INTERMEDIATE), F32)
    p["wo2"] = jnp.stack([nrm(next(keys), (INTERMEDIATE, HIDDEN)) for _ in range(L)])
    p["bo2"] = jnp.zeros((L, 1, HIDDEN), F32)
    p["ln2_g"] = jnp.ones((L, 1, HIDDEN), F32)
    p["ln2_b"] = jnp.zeros((L, 1, HIDDEN), F32)
    return p


# ---- main -------------------------------------------------------------------
if __name__ == "__main__":
    key = jax.random.PRNGKey(0)
    pkey, k_txt, k_img = jax.random.split(key, 3)
    params = init_params(pkey)

    B, T = 2, 8
    input_txt = jax.random.randint(k_txt, (B, T), 0, VOCAB, dtype=jnp.int32)
    attention_mask = jnp.concatenate(
        [jnp.ones((B, T - 2), jnp.int32), jnp.zeros((B, 2), jnp.int32)], axis=1)
    segment = jnp.ones((B, T), jnp.int32)                       # text token type = 1
    input_img = jax.random.normal(k_img, (B, IMG_CH, 16, 16), F32)  # NCHW
    cls_id = jnp.full((B,), 1, jnp.int32)
    sep_id = jnp.full((B,), 2, jnp.int32)

    pooled, rep_info, encoded, image_seq_length = multimodal_bert_forward(
        params, input_txt, attention_mask, segment, input_img, cls_id, sep_id)

    jax.block_until_ready((pooled, encoded, rep_info["bert_embedding"]))
    assert pooled.shape == (B, HIDDEN)
    assert encoded.shape == (B, image_seq_length + T, HIDDEN)
    print("KERNEL_OK")
</pallas_src>

<mosaic_0001>
module attributes {stable_mosaic.version = 11 : i64} {
  func.func @_img_proj_kernel(%arg0: memref<8x192xf32, #tpu.memory_space<vmem>>, %arg1: memref<192x48xf32, #tpu.memory_space<vmem>>, %arg2: memref<1x48xf32, #tpu.memory_space<vmem>>, %arg3: memref<48x32xf32, #tpu.memory_space<vmem>>, %arg4: memref<1x32xf32, #tpu.memory_space<vmem>>, %arg5: memref<8x32xf32, #tpu.memory_space<vmem>>) attributes {dimension_semantics = [], scalar_prefetch = 0 : i64, scratch_operands = 0 : i64, tpu.core_type = #tpu.core_type<tc>} {
    %c0 = arith.constant 0 : index
    %c0_0 = arith.constant 0 : index
    %0 = vector.load %arg0[%c0, %c0_0] : memref<8x192xf32, #tpu.memory_space<vmem>>, vector<8x192xf32>
    %c0_1 = arith.constant 0 : index
    %c0_2 = arith.constant 0 : index
    %1 = vector.load %arg1[%c0_1, %c0_2] : memref<192x48xf32, #tpu.memory_space<vmem>>, vector<192x48xf32>
    %cst = arith.constant dense<0.000000e+00> : vector<8x48xf32>
    %2 = tpu.matmul %0, %1, %cst {dimension_numbers = #tpu.dot_dimension_numbers<[1], [0], [0], [1], [0, 0, 1, 1], [], []>} : vector<8x192xf32>, vector<192x48xf32>, vector<8x48xf32> -> vector<8x48xf32>
    %c0_3 = arith.constant 0 : index
    %c0_4 = arith.constant 0 : index
    %3 = vector.load %arg2[%c0_3, %c0_4] : memref<1x48xf32, #tpu.memory_space<vmem>>, vector<1x48xf32>
    %4 = vector.broadcast %3 : vector<1x48xf32> to vector<8x48xf32>
    %5 = arith.addf %2, %4 : vector<8x48xf32>
    %c0_5 = arith.constant 0 : index
    %c0_6 = arith.constant 0 : index
    %6 = vector.load %arg3[%c0_5, %c0_6] : memref<48x32xf32, #tpu.memory_space<vmem>>, vector<48x32xf32>
    %cst_7 = arith.constant dense<0.000000e+00> : vector<8x32xf32>
    %7 = tpu.matmul %5, %6, %cst_7 {dimension_numbers = #tpu.dot_dimension_numbers<[1], [0], [0], [1], [0, 0, 1, 1], [], []>} : vector<8x48xf32>, vector<48x32xf32>, vector<8x32xf32> -> vector<8x32xf32>
    %c0_8 = arith.constant 0 : index
    %c0_9 = arith.constant 0 : index
    %8 = vector.load %arg4[%c0_8, %c0_9] : memref<1x32xf32, #tpu.memory_space<vmem>>, vector<1x32xf32>
    %9 = vector.broadcast %8 : vector<1x32xf32> to vector<8x32xf32>
    %10 = arith.addf %7, %9 : vector<8x32xf32>
    %c0_10 = arith.constant 0 : index
    %c0_11 = arith.constant 0 : index
    %11 = vector.load %arg5[%c0_10, %c0_11] : memref<8x32xf32, #tpu.memory_space<vmem>>, vector<8x32xf32>
    tpu.vector_store %arg5[%c0_10, %c0_11], %10 {strides = array<i32>} : memref<8x32xf32, #tpu.memory_space<vmem>>, vector<8x32xf32>,
    return
  }
}

module attributes {stable_mosaic.version = 11 : i64} {
  func.func @_encoder_kernel(%arg0: i32, %arg1: memref<28x32xf32, #tpu.memory_space<vmem>>, %arg2: memref<28x28xf32, #tpu.memory_space<vmem>>, %arg3: memref<2x28xf32, #tpu.memory_space<vmem>>, %arg4: memref<1x32xf32, #tpu.memory_space<vmem>>, %arg5: memref<1x32xf32, #tpu.memory_space<vmem>>, %arg6: memref<1x32x96xf32, #tpu.memory_space<vmem>>, %arg7: memref<1x1x96xf32, #tpu.memory_space<vmem>>, %arg8: memref<1x32x32xf32, #tpu.memory_space<vmem>>, %arg9: memref<1x1x32xf32, #tpu.memory_space<vmem>>, %arg10: memref<1x1x32xf32, #tpu.memory_space<vmem>>, %arg11: memref<1x1x32xf32, #tpu.memory_space<vmem>>, %arg12: memref<1x32x128xf32, #tpu.memory_space<vmem>>, %arg13: memref<1x1x128xf32, #tpu.memory_space<vmem>>, %arg14: memref<1x128x32xf32, #tpu.memory_space<vmem>>, %arg15: memref<1x1x32xf32, #tpu.memory_space<vmem>>, %arg16: memref<1x1x32xf32, #tpu.memory_space<vmem>>, %arg17: memref<1x1x32xf32, #tpu.memory_space<vmem>>, %arg18: memref<32x32xf32, #tpu.memory_space<vmem>>, %arg19: memref<1x32xf32, #tpu.memory_space<vmem>>, %arg20: memref<28x32xf32, #tpu.memory_space<vmem>>, %arg21: memref<2x32xf32, #tpu.memory_space<vmem>>, %arg22: memref<28x32xf32, #tpu.memory_space<vmem>>) attributes {dimension_semantics = [#tpu.dimension_semantics<arbitrary>], iteration_bounds = array<i64: 2>, scalar_prefetch = 0 : i64, scratch_operands = 1 : i64, tpu.core_type = #tpu.core_type<tc>, window_params = [{pipeline_mode = #tpu.pipeline_mode<synchronous>, transform_indices = @transform_0, window_bounds = array<i64: 28, 32>}, {pipeline_mode = #tpu.pipeline_mode<synchronous>, transform_indices = @transform_1, window_bounds = array<i64: 28, 28>}, {pipeline_mode = #tpu.pipeline_mode<synchronous>, transform_indices = @transform_2, window_bounds = array<i64: 2, 28>}, {pipeline_mode = #tpu.pipeline_mode<synchronous>, transform_indices = @transform_3, window_bounds = array<i64: 1, 32>}, {pipeline_mode = #tpu.pipeline_mode<synchronous>, transform_indices = @transform_4, window_bounds = array<i64: 1, 32>}, {transform_indices = @transform_5, window_bounds = array<i64: 1, 32, 96>}, {transform_indices = @transform_6, window_bounds = array<i64: 1, 1, 96>}, {transform_indices = @transform_7, window_bounds = array<i64: 1, 32, 32>}, {transform_indices = @transform_8, window_bounds = array<i64: 1, 1, 32>}, {transform_indices = @transform_9, window_bounds = array<i64: 1, 1, 32>}, {transform_indices = @transform_10, window_bounds = array<i64: 1, 1, 32>}, {transform_indices = @transform_11, window_bounds = array<i64: 1, 32, 128>}, {transform_indices = @transform_12, window_bounds = array<i64: 1, 1, 128>}, {transform_indices = @transform_13, window_bounds = array<i64: 1, 128, 32>}, {transform_indices = @transform_14, window_bounds = array<i64: 1, 1, 32>}, {transform_indices = @transform_15, window_bounds = array<i64: 1, 1, 32>}, {transform_indices = @transform_16, window_bounds = array<i64: 1, 1, 32>}, {pipeline_mode = #tpu.pipeline_mode<synchronous>, transform_indices = @transform_17, window_bounds = array<i64: 32, 32>}, {pipeline_mode = #tpu.pipeline_mode<synchronous>, transform_indices = @transform_18, window_bounds = array<i64: 1, 32>}, {pipeline_mode = #tpu.pipeline_mode<synchronous>, transform_indices = @transform_19, window_bounds = array<i64: 28, 32>}, {pipeline_mode = #tpu.pipeline_mode<synchronous>, transform_indices = @transform_20, window_bounds = array<i64: 2, 32>}]} {
    %c0_i32 = arith.constant 0 : i32
    %0 = arith.cmpi eq, %arg0, %c0_i32 : i32
    %1 = arith.extui %0 : i1 to i32
    %c0_i32_0 = arith.constant 0 : i32
    %2 = arith.cmpi ne, %1, %c0_i32_0 : i32
    scf.if %2 {
      %c0_70 = arith.constant 0 : index
      %c0_71 = arith.constant 0 : index
      %144 = vector.load %arg1[%c0_70, %c0_71] : memref<28x32xf32, #tpu.memory_space<vmem>>, vector<28x32xf32>
      %c0_72 = arith.constant 0 : index
      %c0_73 = arith.constant 0 : index
      %145 = vector.load %arg4[%c0_72, %c0_73] : memref<1x32xf32, #tpu.memory_space<vmem>>, vector<1x32xf32>
      %c0_74 = arith.constant 0 : index
      %c0_75 = arith.constant 0 : index
      %146 = vector.load %arg5[%c0_74, %c0_75] : memref<1x32xf32, #tpu.memory_space<vmem>>, vector<1x32xf32>
      %cst_76 = arith.constant dense<0.000000e+00> : vector<28xf32>
      %147 = vector.multi_reduction <add>, %144, %cst_76 [1] : vector<28x32xf32> to vector<28xf32>
      %148 = vector.shape_cast %147 : vector<28xf32> to vector<28x1xf32>
      %cst_77 = arith.constant 3.200000e+01 : f32
      %149 = vector.broadcast %cst_77 : f32 to vector<28x1xf32>
      %150 = arith.divf %148, %149 : vector<28x1xf32>
      %151 = vector.broadcast %150 : vector<28x1xf32> to vector<28x32xf32>
      %152 = arith.subf %144, %151 : vector<28x32xf32>
      %153 = arith.mulf %152, %152 : vector<28x32xf32>
      %cst_78 = arith.constant dense<0.000000e+00> : vector<28xf32>
      %154 = vector.multi_reduction <add>, %153, %cst_78 [1] : vector<28x32xf32> to vector<28xf32>
      %155 = vector.shape_cast %154 : vector<28xf32> to vector<28x1xf32>
      %cst_79 = arith.constant 3.200000e+01 : f32
      %156 = vector.broadcast %cst_79 : f32 to vector<28x1xf32>
      %157 = arith.divf %155, %156 : vector<28x1xf32>
      %158 = vector.broadcast %150 : vector<28x1xf32> to vector<28x32xf32>
      %159 = arith.subf %144, %158 : vector<28x32xf32>
      %cst_80 = arith.constant 9.99999996E-13 : f32
      %160 = vector.broadcast %cst_80 : f32 to vector<28x1xf32>
      %161 = arith.addf %157, %160 : vector<28x1xf32>
      %162 = math.rsqrt %161 : vector<28x1xf32>
      %163 = vector.broadcast %162 : vector<28x1xf32> to vector<28x32xf32>
      %164 = arith.mulf %159, %163 : vector<28x32xf32>
      %165 = vector.broadcast %145 : vector<1x32xf32> to vector<28x32xf32>
      %166 = arith.mulf %164, %165 : vector<28x32xf32>
      %167 = vector.broadcast %146 : vector<1x32xf32> to vector<28x32xf32>
      %168 = arith.addf %166, %167 : vector<28x32xf32>
      %c0_81 = arith.constant 0 : index
      %c0_82 = arith.constant 0 : index
      %169 = vector.load %arg22[%c0_81, %c0_82] : memref<28x32xf32, #tpu.memory_space<vmem>>, vector<28x32xf32>
      tpu.vector_store %arg22[%c0_81, %c0_82], %168 {strides = array<i32>} : memref<28x32xf32, #tpu.memory_space<vmem>>, vector<28x32xf32>,
    } else {
    }
    %c0 = arith.constant 0 : index
    %c0_1 = arith.constant 0 : index
    %3 = vector.load %arg22[%c0, %c0_1] : memref<28x32xf32, #tpu.memory_space<vmem>>, vector<28x32xf32>
    %c0_2 = arith.constant 0 : index
    %c0_3 = arith.constant 0 : index
    %4 = vector.load %arg2[%c0_2, %c0_3] : memref<28x28xf32, #tpu.memory_space<vmem>>, vector<28x28xf32>
    %c0_4 = arith.constant 0 : index
    %c0_5 = arith.constant 0 : index
    %c0_6 = arith.constant 0 : index
    %5 = vector.load %arg6[%c0_4, %c0_5, %c0_6] : memref<1x32x96xf32, #tpu.memory_space<vmem>>, vector<1x32x96xf32>
    %6 = vector.shape_cast %5 : vector<1x32x96xf32> to vector<32x96xf32>
    %cst = arith.constant dense<0.000000e+00> : vector<28x96xf32>
    %7 = tpu.matmul %3, %6, %cst {dimension_numbers = #tpu.dot_dimension_numbers<[1], [0], [0], [1], [0, 0, 1, 1], [], []>} : vector<28x32xf32>, vector<32x96xf32>, vector<28x96xf32> -> vector<28x96xf32>
    %c0_7 = arith.constant 0 : index
    %c0_8 = arith.constant 0 : index
    %c0_9 = arith.constant 0 : index
    %8 = vector.load %arg7[%c0_7, %c0_8, %c0_9] : memref<1x1x96xf32, #tpu.memory_space<vmem>>, vector<1x1x96xf32>
    %9 = vector.shape_cast %8 : vector<1x1x96xf32> to vector<1x96xf32>
    %10 = vector.broadcast %9 : vector<1x96xf32> to vector<28x96xf32>
    %11 = arith.addf %7, %10 : vector<28x96xf32>
    %12 = vector.extract_strided_slice %11 {offsets = [0, 0], sizes = [28, 32], strides = [1, 1]} : vector<28x96xf32> to vector<28x32xf32>
    %13 = vector.extract_strided_slice %11 {offsets = [0, 32], sizes = [28, 32], strides = [1, 1]} : vector<28x96xf32> to vector<28x32xf32>
    %14 = vector.extract_strided_slice %11 {offsets = [0, 64], sizes = [28, 32], strides = [1, 1]} : vector<28x96xf32> to vector<28x32xf32>
    %15 = vector.extract_strided_slice %12 {offsets = [0, 0], sizes = [28, 16], strides = [1, 1]} : vector<28x32xf32> to vector<28x16xf32>
    %16 = vector.extract_strided_slice %13 {offsets = [0, 0], sizes = [28, 16], strides = [1, 1]} : vector<28x32xf32> to vector<28x16xf32>
    %17 = tpu.transpose %16, [1, 0] : vector<28x16xf32> -> vector<16x28xf32>
    %cst_10 = arith.constant dense<0.000000e+00> : vector<28x28xf32>
    %18 = tpu.matmul %15, %17, %cst_10 {dimension_numbers = #tpu.dot_dimension_numbers<[1], [0], [0], [1], [0, 0, 1, 1], [], []>} : vector<28x16xf32>, vector<16x28xf32>, vector<28x28xf32> -> vector<28x28xf32>
    %cst_11 = arith.constant 2.500000e-01 : f32
    %19 = vector.broadcast %cst_11 : f32 to vector<28x28xf32>
    %20 = arith.mulf %18, %19 : vector<28x28xf32>
    %21 = arith.addf %20, %4 : vector<28x28xf32>
    %cst_12 = arith.constant dense<0xFF800000> : vector<28xf32>
    %22 = vector.multi_reduction <maximumf>, %21, %cst_12 [1] : vector<28x28xf32> to vector<28xf32>
    %23 = vector.shape_cast %22 : vector<28xf32> to vector<28x1xf32>
    %24 = vector.broadcast %23 : vector<28x1xf32> to vector<28x28xf32>
    %25 = arith.subf %21, %24 : vector<28x28xf32>
    %26 = math.exp %25 : vector<28x28xf32>
    %cst_13 = arith.constant dense<0.000000e+00> : vector<28xf32>
    %27 = vector.multi_reduction <add>, %26, %cst_13 [1] : vector<28x28xf32> to vector<28xf32>
    %28 = vector.shape_cast %27 : vector<28xf32> to vector<28x1xf32>
    %29 = vector.broadcast %28 : vector<28x1xf32> to vector<28x28xf32>
    %30 = arith.divf %26, %29 : vector<28x28xf32>
    %31 = vector.extract_strided_slice %14 {offsets = [0, 0], sizes = [28, 16], strides = [1, 1]} : vector<28x32xf32> to vector<28x16xf32>
    %cst_14 = arith.constant dense<0.000000e+00> : vector<28x16xf32>
    %32 = tpu.matmul %30, %31, %cst_14 {dimension_numbers = #tpu.dot_dimension_numbers<[1], [0], [0], [1], [0, 0, 1, 1], [], []>} : vector<28x28xf32>, vector<28x16xf32>, vector<28x16xf32> -> vector<28x16xf32>
    %33 = vector.extract_strided_slice %12 {offsets = [0, 16], sizes = [28, 16], strides = [1, 1]} : vector<28x32xf32> to vector<28x16xf32>
    %34 = vector.extract_strided_slice %13 {offsets = [0, 16], sizes = [28, 16], strides = [1, 1]} : vector<28x32xf32> to vector<28x16xf32>
    %35 = tpu.transpose %34, [1, 0] : vector<28x16xf32> -> vector<16x28xf32>
    %cst_15 = arith.constant dense<0.000000e+00> : vector<28x28xf32>
    %36 = tpu.matmul %33, %35, %cst_15 {dimension_numbers = #tpu.dot_dimension_numbers<[1], [0], [0], [1], [0, 0, 1, 1], [], []>} : vector<28x16xf32>, vector<16x28xf32>, vector<28x28xf32> -> vector<28x28xf32>
    %cst_16 = arith.constant 2.500000e-01 : f32
    %37 = vector.broadcast %cst_16 : f32 to vector<28x28xf32>
    %38 = arith.mulf %36, %37 : vector<28x28xf32>
    %39 = arith.addf %38, %4 : vector<28x28xf32>
    %cst_17 = arith.constant dense<0xFF800000> : vector<28xf32>
    %40 = vector.multi_reduction <maximumf>, %39, %cst_17 [1] : vector<28x28xf32> to vector<28xf32>
    %41 = vector.shape_cast %40 : vector<28xf32> to vector<28x1xf32>
    %42 = vector.broadcast %41 : vector<28x1xf32> to vector<28x28xf32>
    %43 = arith.subf %39, %42 : vector<28x28xf32>
    %44 = math.exp %43 : vector<28x28xf32>
    %cst_18 = arith.constant dense<0.000000e+00> : vector<28xf32>
    %45 = vector.multi_reduction <add>, %44, %cst_18 [1] : vector<28x28xf32> to vector<28xf32>
    %46 = vector.shape_cast %45 : vector<28xf32> to vector<28x1xf32>
    %47 = vector.broadcast %46 : vector<28x1xf32> to vector<28x28xf32>
    %48 = arith.divf %44, %47 : vector<28x28xf32>
    %49 = vector.extract_strided_slice %14 {offsets = [0, 16], sizes = [28, 16], strides = [1, 1]} : vector<28x32xf32> to vector<28x16xf32>
    %cst_19 = arith.constant dense<0.000000e+00> : vector<28x16xf32>
    %50 = tpu.matmul %48, %49, %cst_19 {dimension_numbers = #tpu.dot_dimension_numbers<[1], [0], [0], [1], [0, 0, 1, 1], [], []>} : vector<28x28xf32>, vector<28x16xf32>, vector<28x16xf32> -> vector<28x16xf32>
    %51 = tpu.concatenate %32, %50 in 1 : vector<28x16xf32>, vector<28x16xf32> -> vector<28x32xf32>
    %c0_20 = arith.constant 0 : index
    %c0_21 = arith.constant 0 : index
    %c0_22 = arith.constant 0 : index
    %52 = vector.load %arg8[%c0_20, %c0_21, %c0_22] : memref<1x32x32xf32, #tpu.memory_space<vmem>>, vector<1x32x32xf32>
    %53 = vector.shape_cast %52 : vector<1x32x32xf32> to vector<32x32xf32>
    %cst_23 = arith.constant dense<0.000000e+00> : vector<28x32xf32>
    %54 = tpu.matmul %51, %53, %cst_23 {dimension_numbers = #tpu.dot_dimension_numbers<[1], [0], [0], [1], [0, 0, 1, 1], [], []>} : vector<28x32xf32>, vector<32x32xf32>, vector<28x32xf32> -> vector<28x32xf32>
    %c0_24 = arith.constant 0 : index
    %c0_25 = arith.constant 0 : index
    %c0_26 = arith.constant 0 : index
    %55 = vector.load %arg9[%c0_24, %c0_25, %c0_26] : memref<1x1x32xf32, #tpu.memory_space<vmem>>, vector<1x1x32xf32>
    %56 = vector.shape_cast %55 : vector<1x1x32xf32> to vector<1x32xf32>
    %57 = vector.broadcast %56 : vector<1x32xf32> to vector<28x32xf32>
    %58 = arith.addf %54, %57 : vector<28x32xf32>
    %59 = arith.addf %58, %3 : vector<28x32xf32>
    %c0_27 = arith.constant 0 : index
    %c0_28 = arith.constant 0 : index
    %c0_29 = arith.constant 0 : index
    %60 = vector.load %arg10[%c0_27, %c0_28, %c0_29] : memref<1x1x32xf32, #tpu.memory_space<vmem>>, vector<1x1x32xf32>
    %61 = vector.shape_cast %60 : vector<1x1x32xf32> to vector<1x32xf32>
    %c0_30 = arith.constant 0 : index
    %c0_31 = arith.constant 0 : index
    %c0_32 = arith.constant 0 : index
    %62 = vector.load %arg11[%c0_30, %c0_31, %c0_32] : memref<1x1x32xf32, #tpu.memory_space<vmem>>, vector<1x1x32xf32>
    %63 = vector.shape_cast %62 : vector<1x1x32xf32> to vector<1x32xf32>
    %cst_33 = arith.constant dense<0.000000e+00> : vector<28xf32>
    %64 = vector.multi_reduction <add>, %59, %cst_33 [1] : vector<28x32xf32> to vector<28xf32>
    %65 = vector.shape_cast %64 : vector<28xf32> to vector<28x1xf32>
    %cst_34 = arith.constant 3.200000e+01 : f32
    %66 = vector.broadcast %cst_34 : f32 to vector<28x1xf32>
    %67 = arith.divf %65, %66 : vector<28x1xf32>
    %68 = vector.broadcast %67 : vector<28x1xf32> to vector<28x32xf32>
    %69 = arith.subf %59, %68 : vector<28x32xf32>
    %70 = arith.mulf %69, %69 : vector<28x32xf32>
    %cst_35 = arith.constant dense<0.000000e+00> : vector<28xf32>
    %71 = vector.multi_reduction <add>, %70, %cst_35 [1] : vector<28x32xf32> to vector<28xf32>
    %72 = vector.shape_cast %71 : vector<28xf32> to vector<28x1xf32>
    %cst_36 = arith.constant 3.200000e+01 : f32
    %73 = vector.broadcast %cst_36 : f32 to vector<28x1xf32>
    %74 = arith.divf %72, %73 : vector<28x1xf32>
    %75 = vector.broadcast %67 : vector<28x1xf32> to vector<28x32xf32>
    %76 = arith.subf %59, %75 : vector<28x32xf32>
    %cst_37 = arith.constant 9.99999996E-13 : f32
    %77 = vector.broadcast %cst_37 : f32 to vector<28x1xf32>
    %78 = arith.addf %74, %77 : vector<28x1xf32>
    %79 = math.rsqrt %78 : vector<28x1xf32>
    %80 = vector.broadcast %79 : vector<28x1xf32> to vector<28x32xf32>
    %81 = arith.mulf %76, %80 : vector<28x32xf32>
    %82 = vector.broadcast %61 : vector<1x32xf32> to vector<28x32xf32>
    %83 = arith.mulf %81, %82 : vector<28x32xf32>
    %84 = vector.broadcast %63 : vector<1x32xf32> to vector<28x32xf32>
    %85 = arith.addf %83, %84 : vector<28x32xf32>
    %c0_38 = arith.constant 0 : index
    %c0_39 = arith.constant 0 : index
    %c0_40 = arith.constant 0 : index
    %86 = vector.load %arg12[%c0_38, %c0_39, %c0_40] : memref<1x32x128xf32, #tpu.memory_space<vmem>>, vector<1x32x128xf32>
    %87 = vector.shape_cast %86 : vector<1x32x128xf32> to vector<32x128xf32>
    %cst_41 = arith.constant dense<0.000000e+00> : vector<28x128xf32>
    %88 = tpu.matmul %85, %87, %cst_41 {dimension_numbers = #tpu.dot_dimension_numbers<[1], [0], [0], [1], [0, 0, 1, 1], [], []>} : vector<28x32xf32>, vector<32x128xf32>, vector<28x128xf32> -> vector<28x128xf32>
    %c0_42 = arith.constant 0 : index
    %c0_43 = arith.constant 0 : index
    %c0_44 = arith.constant 0 : index
    %89 = vector.load %arg13[%c0_42, %c0_43, %c0_44] : memref<1x1x128xf32, #tpu.memory_space<vmem>>, vector<1x1x128xf32>
    %90 = vector.shape_cast %89 : vector<1x1x128xf32> to vector<1x128xf32>
    %91 = vector.broadcast %90 : vector<1x128xf32> to vector<28x128xf32>
    %92 = arith.addf %88, %91 : vector<28x128xf32>
    %93 = arith.mulf %92, %92 : vector<28x128xf32>
    %94 = arith.mulf %92, %93 : vector<28x128xf32>
    %cst_45 = arith.constant 4.471500e-02 : f32
    %95 = vector.broadcast %cst_45 : f32 to vector<28x128xf32>
    %96 = arith.mulf %95, %94 : vector<28x128xf32>
    %97 = arith.addf %92, %96 : vector<28x128xf32>
    %cst_46 = arith.constant 0.797884583 : f32
    %98 = vector.broadcast %cst_46 : f32 to vector<28x128xf32>
    %99 = arith.mulf %98, %97 : vector<28x128xf32>
    %100 = math.tanh %99 : vector<28x128xf32>
    %cst_47 = arith.constant 1.000000e+00 : f32
    %101 = vector.broadcast %cst_47 : f32 to vector<28x128xf32>
    %102 = arith.addf %101, %100 : vector<28x128xf32>
    %cst_48 = arith.constant 5.000000e-01 : f32
    %103 = vector.broadcast %cst_48 : f32 to vector<28x128xf32>
    %104 = arith.mulf %103, %102 : vector<28x128xf32>
    %105 = arith.mulf %92, %104 : vector<28x128xf32>
    %c0_49 = arith.constant 0 : index
    %c0_50 = arith.constant 0 : index
    %c0_51 = arith.constant 0 : index
    %106 = vector.load %arg14[%c0_49, %c0_50, %c0_51] : memref<1x128x32xf32, #tpu.memory_space<vmem>>, vector<1x128x32xf32>
    %107 = vector.shape_cast %106 : vector<1x128x32xf32> to vector<128x32xf32>
    %cst_52 = arith.constant dense<0.000000e+00> : vector<28x32xf32>
    %108 = tpu.matmul %105, %107, %cst_52 {dimension_numbers = #tpu.dot_dimension_numbers<[1], [0], [0], [1], [0, 0, 1, 1], [], []>} : vector<28x128xf32>, vector<128x32xf32>, vector<28x32xf32> -> vector<28x32xf32>
    %c0_53 = arith.constant 0 : index
    %c0_54 = arith.constant 0 : index
    %c0_55 = arith.constant 0 : index
    %109 = vector.load %arg15[%c0_53, %c0_54, %c0_55] : memref<1x1x32xf32, #tpu.memory_space<vmem>>, vector<1x1x32xf32>
    %110 = vector.shape_cast %109 : vector<1x1x32xf32> to vector<1x32xf32>
    %111 = vector.broadcast %110 : vector<1x32xf32> to vector<28x32xf32>
    %112 = arith.addf %108, %111 : vector<28x32xf32>
    %113 = arith.addf %112, %85 : vector<28x32xf32>
    %c0_56 = arith.constant 0 : index
    %c0_57 = arith.constant 0 : index
    %c0_58 = arith.constant 0 : index
    %114 = vector.load %arg16[%c0_56, %c0_57, %c0_58] : memref<1x1x32xf32, #tpu.memory_space<vmem>>, vector<1x1x32xf32>
    %115 = vector.shape_cast %114 : vector<1x1x32xf32> to vector<1x32xf32>
    %c0_59 = arith.constant 0 : index
    %c0_60 = arith.constant 0 : index
    %c0_61 = arith.constant 0 : index
    %116 = vector.load %arg17[%c0_59, %c0_60, %c0_61] : memref<1x1x32xf32, #tpu.memory_space<vmem>>, vector<1x1x32xf32>
    %117 = vector.shape_cast %116 : vector<1x1x32xf32> to vector<1x32xf32>
    %cst_62 = arith.constant dense<0.000000e+00> : vector<28xf32>
    %118 = vector.multi_reduction <add>, %113, %cst_62 [1] : vector<28x32xf32> to vector<28xf32>
    %119 = vector.shape_cast %118 : vector<28xf32> to vector<28x1xf32>
    %cst_63 = arith.constant 3.200000e+01 : f32
    %120 = vector.broadcast %cst_63 : f32 to vector<28x1xf32>
    %121 = arith.divf %119, %120 : vector<28x1xf32>
    %122 = vector.broadcast %121 : vector<28x1xf32> to vector<28x32xf32>
    %123 = arith.subf %113, %122 : vector<28x32xf32>
    %124 = arith.mulf %123, %123 : vector<28x32xf32>
    %cst_64 = arith.constant dense<0.000000e+00> : vector<28xf32>
    %125 = vector.multi_reduction <add>, %124, %cst_64 [1] : vector<28x32xf32> to vector<28xf32>
    %126 = vector.shape_cast %125 : vector<28xf32> to vector<28x1xf32>
    %cst_65 = arith.constant 3.200000e+01 : f32
    %127 = vector.broadcast %cst_65 : f32 to vector<28x1xf32>
    %128 = arith.divf %126, %127 : vector<28x1xf32>
    %129 = vector.broadcast %121 : vector<28x1xf32> to vector<28x32xf32>
    %130 = arith.subf %113, %129 : vector<28x32xf32>
    %cst_66 = arith.constant 9.99999996E-13 : f32
    %131 = vector.broadcast %cst_66 : f32 to vector<28x1xf32>
    %132 = arith.addf %128, %131 : vector<28x1xf32>
    %133 = math.rsqrt %132 : vector<28x1xf32>
    %134 = vector.broadcast %133 : vector<28x1xf32> to vector<28x32xf32>
    %135 = arith.mulf %130, %134 : vector<28x32xf32>
    %136 = vector.broadcast %115 : vector<1x32xf32> to vector<28x32xf32>
    %137 = arith.mulf %135, %136 : vector<28x32xf32>
    %138 = vector.broadcast %117 : vector<1x32xf32> to vector<28x32xf32>
    %139 = arith.addf %137, %138 : vector<28x32xf32>
    %c0_67 = arith.constant 0 : index
    %c0_68 = arith.constant 0 : index
    %140 = vector.load %arg22[%c0_67, %c0_68] : memref<28x32xf32, #tpu.memory_space<vmem>>, vector<28x32xf32>
    tpu.vector_store %arg22[%c0_67, %c0_68], %139 {strides = array<i32>} : memref<28x32xf32, #tpu.memory_space<vmem>>, vector<28x32xf32>,
    %c1_i32 = arith.constant 1 : i32
    %141 = arith.cmpi eq, %arg0, %c1_i32 : i32
    %142 = arith.extui %141 : i1 to i32
    %c0_i32_69 = arith.constant 0 : i32
    %143 = arith.cmpi ne, %142, %c0_i32_69 : i32
    scf.if %143 {
      %c0_70 = arith.constant 0 : index
      %c0_71 = arith.constant 0 : index
      %144 = vector.load %arg20[%c0_70, %c0_71] : memref<28x32xf32, #tpu.memory_space<vmem>>, vector<28x32xf32>
      tpu.vector_store %arg20[%c0_70, %c0_71], %139 {strides = array<i32>} : memref<28x32xf32, #tpu.memory_space<vmem>>, vector<28x32xf32>,
      %c0_72 = arith.constant 0 : index
      %c0_73 = arith.constant 0 : index
      %145 = vector.load %arg3[%c0_72, %c0_73] : memref<2x28xf32, #tpu.memory_space<vmem>>, vector<2x28xf32>
      %cst_74 = arith.constant dense<0.000000e+00> : vector<2x32xf32>
      %146 = tpu.matmul %145, %139, %cst_74 {dimension_numbers = #tpu.dot_dimension_numbers<[1], [0], [0], [1], [0, 0, 1, 1], [], []>} : vector<2x28xf32>, vector<28x32xf32>, vector<2x32xf32> -> vector<2x32xf32>
      %c0_75 = arith.constant 0 : index
      %c0_76 = arith.constant 0 : index
      %147 = vector.load %arg18[%c0_75, %c0_76] : memref<32x32xf32, #tpu.memory_space<vmem>>, vector<32x32xf32>
      %cst_77 = arith.constant dense<0.000000e+00> : vector<2x32xf32>
      %148 = tpu.matmul %146, %147, %cst_77 {dimension_numbers = #tpu.dot_dimension_numbers<[1], [0], [0], [1], [0, 0, 1, 1], [], []>} : vector<2x32xf32>, vector<32x32xf32>, vector<2x32xf32> -> vector<2x32xf32>
      %c0_78 = arith.constant 0 : index
      %c0_79 = arith.constant 0 : index
      %149 = vector.load %arg19[%c0_78, %c0_79] : memref<1x32xf32, #tpu.memory_space<vmem>>, vector<1x32xf32>
      %150 = vector.broadcast %149 : vector<1x32xf32> to vector<2x32xf32>
      %151 = arith.addf %148, %150 : vector<2x32xf32>
      %152 = math.tanh %151 : vector<2x32xf32>
      %c0_80 = arith.constant 0 : index
      %c0_81 = arith.constant 0 : index
      %153 = vector.load %arg21[%c0_80, %c0_81] : memref<2x32xf32, #tpu.memory_space<vmem>>, vector<2x32xf32>
      tpu.vector_store %arg21[%c0_80, %c0_81], %152 {strides = array<i32>} : memref<2x32xf32, #tpu.memory_space<vmem>>, vector<2x32xf32>,
    } else {
    }
    return
  }
  func.func @transform_0(%arg0: i32) -> (i32, i32) {
    %c0_i32 = arith.constant 0 : i32
    %c0_i32_0 = arith.constant 0 : i32
    %c0_i32_1 = arith.constant 0 : i32
    return %c0_i32, %c0_i32_0 : i32, i32
  }
  func.func @transform_1(%arg0: i32) -> (i32, i32) {
    %c0_i32 = arith.constant 0 : i32
    %c0_i32_0 = arith.constant 0 : i32
    %c0_i32_1 = arith.constant 0 : i32
    return %c0_i32, %c0_i32_0 : i32, i32
  }
  func.func @transform_2(%arg0: i32) -> (i32, i32) {
    %c0_i32 = arith.constant 0 : i32
    %c0_i32_0 = arith.constant 0 : i32
    %c0_i32_1 = arith.constant 0 : i32
    return %c0_i32, %c0_i32_0 : i32, i32
  }
  func.func @transform_3(%arg0: i32) -> (i32, i32) {
    %c0_i32 = arith.constant 0 : i32
    %c0_i32_0 = arith.constant 0 : i32
    %c0_i32_1 = arith.constant 0 : i32
    return %c0_i32, %c0_i32_0 : i32, i32
  }
  func.func @transform_4(%arg0: i32) -> (i32, i32) {
    %c0_i32 = arith.constant 0 : i32
    %c0_i32_0 = arith.constant 0 : i32
    %c0_i32_1 = arith.constant 0 : i32
    return %c0_i32, %c0_i32_0 : i32, i32
  }
  func.func @transform_5(%arg0: i32) -> (i32, i32, i32) {
    %c0_i32 = arith.constant 0 : i32
    %c0_i32_0 = arith.constant 0 : i32
    %c0_i32_1 = arith.constant 0 : i32
    return %arg0, %c0_i32, %c0_i32_0 : i32, i32, i32
  }
  func.func @transform_6(%arg0: i32) -> (i32, i32, i32) {
    %c0_i32 = arith.constant 0 : i32
    %c0_i32_0 = arith.constant 0 : i32
    %c0_i32_1 = arith.constant 0 : i32
    return %arg0, %c0_i32, %c0_i32_0 : i32, i32, i32
  }
  func.func @transform_7(%arg0: i32) -> (i32, i32, i32) {
    %c0_i32 = arith.constant 0 : i32
    %c0_i32_0 = arith.constant 0 : i32
    %c0_i32_1 = arith.constant 0 : i32
    return %arg0, %c0_i32, %c0_i32_0 : i32, i32, i32
  }
  func.func @transform_8(%arg0: i32) -> (i32, i32, i32) {
    %c0_i32 = arith.constant 0 : i32
    %c0_i32_0 = arith.constant 0 : i32
    %c0_i32_1 = arith.constant 0 : i32
    return %arg0, %c0_i32, %c0_i32_0 : i32, i32, i32
  }
  func.func @transform_9(%arg0: i32) -> (i32, i32, i32) {
    %c0_i32 = arith.constant 0 : i32
    %c0_i32_0 = arith.constant 0 : i32
    %c0_i32_1 = arith.constant 0 : i32
    return %arg0, %c0_i32, %c0_i32_0 : i32, i32, i32
  }
  func.func @transform_10(%arg0: i32) -> (i32, i32, i32) {
    %c0_i32 = arith.constant 0 : i32
    %c0_i32_0 = arith.constant 0 : i32
    %c0_i32_1 = arith.constant 0 : i32
    return %arg0, %c0_i32, %c0_i32_0 : i32, i32, i32
  }
  func.func @transform_11(%arg0: i32) -> (i32, i32, i32) {
    %c0_i32 = arith.constant 0 : i32
    %c0_i32_0 = arith.constant 0 : i32
    %c0_i32_1 = arith.constant 0 : i32
    return %arg0, %c0_i32, %c0_i32_0 : i32, i32, i32
  }
  func.func @transform_12(%arg0: i32) -> (i32, i32, i32) {
    %c0_i32 = arith.constant 0 : i32
    %c0_i32_0 = arith.constant 0 : i32
    %c0_i32_1 = arith.constant 0 : i32
    return %arg0, %c0_i32, %c0_i32_0 : i32, i32, i32
  }
  func.func @transform_13(%arg0: i32) -> (i32, i32, i32) {
    %c0_i32 = arith.constant 0 : i32
    %c0_i32_0 = arith.constant 0 : i32
    %c0_i32_1 = arith.constant 0 : i32
    return %arg0, %c0_i32, %c0_i32_0 : i32, i32, i32
  }
  func.func @transform_14(%arg0: i32) -> (i32, i32, i32) {
    %c0_i32 = arith.constant 0 : i32
    %c0_i32_0 = arith.constant 0 : i32
    %c0_i32_1 = arith.constant 0 : i32
    return %arg0, %c0_i32, %c0_i32_0 : i32, i32, i32
  }
  func.func @transform_15(%arg0: i32) -> (i32, i32, i32) {
    %c0_i32 = arith.constant 0 : i32
    %c0_i32_0 = arith.constant 0 : i32
    %c0_i32_1 = arith.constant 0 : i32
    return %arg0, %c0_i32, %c0_i32_0 : i32, i32, i32
  }
  func.func @transform_16(%arg0: i32) -> (i32, i32, i32) {
    %c0_i32 = arith.constant 0 : i32
    %c0_i32_0 = arith.constant 0 : i32
    %c0_i32_1 = arith.constant 0 : i32
    return %arg0, %c0_i32, %c0_i32_0 : i32, i32, i32
  }
  func.func @transform_17(%arg0: i32) -> (i32, i32) {
    %c0_i32 = arith.constant 0 : i32
    %c0_i32_0 = arith.constant 0 : i32
    %c0_i32_1 = arith.constant 0 : i32
    return %c0_i32, %c0_i32_0 : i32, i32
  }
  func.func @transform_18(%arg0: i32) -> (i32, i32) {
    %c0_i32 = arith.constant 0 : i32
    %c0_i32_0 = arith.constant 0 : i32
    %c0_i32_1 = arith.constant 0 : i32
    return %c0_i32, %c0_i32_0 : i32, i32
  }
  func.func @transform_19(%arg0: i32) -> (i32, i32) {
    %c0_i32 = arith.constant 0 : i32
    %c0_i32_0 = arith.constant 0 : i32
    %c0_i32_1 = arith.constant 0 : i32
    return %c0_i32, %c0_i32_0 : i32, i32
  }
  func.func @transform_20(%arg0: i32) -> (i32, i32) {
    %c0_i32 = arith.constant 0 : i32
    %c0_i32_0 = arith.constant 0 : i32
    %c0_i32_1 = arith.constant 0 : i32
    return %c0_i32, %c0_i32_0 : i32, i32
  }
}

</mosaic_0001>

<bundles_post_ra>
// kernel: eq.8
= control target key start
LH: loop header
LB: loop body
LE: loop exit
PB: predicated region body
PF: predicated region fallthrough
CT: control target
= control target key end

     0   :  { %vm7_vm0 = vcmask 113664   ;;  %vm13_vm1 = vcmask 228464   ;;  %s39_s0 = inlined_call_operand.vmem [shape: s32[2,14], index: 0, kind: input, shape index: {}]   ;;  %s40_s1 = inlined_call_operand.vmem [shape: s32[28], index: 1, kind: output, shape index: {}]  }
   0x1   :  { %v4_v0 = vld [vmem:[%s39_s0] sm:$0x3]  ;;  %s22_s0 = smov 14  }
   0x2   :  { %5 = vst [vmem:[#allocation1] sm:$0x3] %v4_v0 }
   0x9   :  { %v10_v1 = vld [vmem:[#allocation1 + $0x1] sm:$0x1]   ;;  %v6_v2 = vld [vmem:[#allocation1] sm:$0x1]  }
   0xa   :  { %11 = vrot.lane.b32.xlu0 %v10_v1, %s22_s0  ;;  %8 = vst.msk [vmem:[#allocation0] sm:$0x1] %vm7_vm0, %v6_v2  }
  0x7c   :  { %v12_v3 = vpop.permute.xlu0 %11  }
  0x7d   :  { %14 = vst.msk [vmem:[#allocation0] sm:$0x1] %vm13_vm1, %v12_v3  }
  0x84   :  { %v18_v4 = vld [vmem:[#allocation0] sm:$0x1] }
  0x85   :  { %20 = vst [vmem:[%s40_s1] sm:$0x1] %v18_v4 }

// kernel: _forward_jit.2
= control target key start
LH: loop header
LB: loop body
LE: loop exit
PB: predicated region body
PF: predicated region fallthrough
CT: control target
= control target key end

     0   :  { %v294_v0 = vmov 0.0|0.0   ;;  %vm53_vm0 = vcmask 523264   ;;  %vm295_vm1 = vmmov 0   ;;  %v296_v48 = vmov 0.0   ;;  %s447_s1 = inlined_call_operand.vmem [shape: f32[192,48], index: 1, kind: input, shape index: {}]   ;;  %s448_s0 = inlined_call_operand.vmem [shape: f32[8,192], index: 0, kind: input, shape index: {}]   ;;  %s449_s3 = inlined_call_operand.vmem [shape: f32[48,32], index: 3, kind: input, shape index: {}]   ;;  %s450_s2 = inlined_call_operand.vmem [shape: f32[1,48], index: 2, kind: input, shape index: {}]   ;;  %s451_s4 = inlined_call_operand.vmem [shape: f32[1,32], index: 4, kind: input, shape index: {}]   ;;  %s452_s5 = inlined_call_operand.vmem [shape: f32[8,32], index: 5, kind: output, shape index: {}]  }
   0x1   :  { %246 = vmatprep.subr.bf16.mxu0 %v294_v0  ;;  %v22_v1 = vld [vmem:[%s447_s1] sm:$0xff]  ;;  %v23_v2 = vld [vmem:[%s447_s1 + $0x8] sm:$0xff]  ;;  %v24_v3 = vld [vmem:[%s447_s1 + $0x10] sm:$0xff]  ;;  %282 = vmatprep.subr.bf16.mxu1 %v294_v0  ;;  %vm140_vm2 = vcmask 392192   ;;  %vm214_vm3 = vcmask 261120  }
   0x2   :  { %v247_v4 = vpack.c.bf16 %v23_v2, %v22_v1  ;;  %v25_v5 = vld [vmem:[%s447_s1 + $0x18] sm:$0xff]  ;;  %v26_v7 = vld [vmem:[%s447_s1 + $0x20] sm:$0xff]  ;;  %v27_v8 = vld [vmem:[%s447_s1 + $0x28] sm:$0xff]  ;;  %243 = vmatprep.mubr.msk.f32.mxu1 %vm295_vm1, %v296_v48 }
   0x3   :  { %v250_v6 = vpack.c.bf16 %v25_v5, %v24_v3  ;;  %v253_v9 = vpack.c.bf16 %v27_v8, %v26_v7  ;;  %v28_v10 = vld [vmem:[%s447_s1 + $0x30] sm:$0xff]  ;;  %v29_v11 = vld [vmem:[%s447_s1 + $0x38] sm:$0xff]  ;;  %v21_v12 = vld [vmem:[%s448_s0 + $0x8] sm:$0xff] }
   0x4   :  { %248 = vmatpush1.bf16.msra.mxu0 %v247_v4  ;;  %v127_v13 = vld [vmem:[%s449_s3] sm:$0xff]  ;;  %221 = vmatprep.mubr.msk.f32.mxu0 %vm53_vm0, %v21_v12  ;;  %v128_v14 = vld [vmem:[%s449_s3 + $0x8] sm:$0xff]  ;;  %v129_v15 = vld [vmem:[%s449_s3 + $0x10] sm:$0xff]  ;;  %v256_v18 = vpack.c.bf16 %v29_v11, %v28_v10 }
   0x5   :  { %249 = vmatprep.subr.bf16.mxu0 %v294_v0  ;;  %v130_v16 = vld [vmem:[%s449_s3 + $0x18] sm:$0xff]  ;;  %v283_v17 = vpack.c.bf16 %v128_v14, %v127_v13  ;;  %v30_v19 = vld [vmem:[%s447_s1 + $0x40] sm:$0xff]  ;;  %v31_v20 = vld [vmem:[%s447_s1 + $0x48] sm:$0xff] }
   0x6   :  { %v286_v21 = vpack.c.bf16 %v130_v16, %v129_v15  ;;  %v259_v22 = vpack.c.bf16 %v31_v20, %v30_v19  ;;  %v32_v23 = vld [vmem:[%s447_s1 + $0x50] sm:$0xff]  ;;  %v33_v24 = vld [vmem:[%s447_s1 + $0x58] sm:$0xff]  ;;  %v34_v26 = vld [vmem:[%s447_s1 + $0x60] sm:$0xff] }
   0x7   :  { %284 = vmatpush3.bf16.msra.mxu1 %v283_v17  ;;  %v262_v25 = vpack.c.bf16 %v33_v24, %v32_v23  ;;  %v35_v27 = vld [vmem:[%s447_s1 + $0x68] sm:$0xff]  ;;  %v36_v29 = vld [vmem:[%s447_s1 + $0x70] sm:$0xff]  ;;  %v37_v30 = vld [vmem:[%s447_s1 + $0x78] sm:$0xff] }
   0x8   :  { %251 = vmatpush1.bf16.msra.mxu0 %v250_v6  ;;  %285 = vmatprep.subr.bf16.mxu1 %v294_v0  ;;  %v265_v28 = vpack.c.bf16 %v35_v27, %v34_v26  ;;  %v268_v31 = vpack.c.bf16 %v37_v30, %v36_v29  ;;  %v38_v32 = vld [vmem:[%s447_s1 + $0x80] sm:$0xff]  ;;  %v39_v33 = vld [vmem:[%s447_s1 + $0x88] sm:$0xff]  ;;  %v40_v35 = vld [vmem:[%s447_s1 + $0x90] sm:$0xff] }
   0x9   :  { %252 = vmatprep.subr.bf16.mxu0 %v294_v0  ;;  %v271_v34 = vpack.c.bf16 %v39_v33, %v38_v32  ;;  %v41_v36 = vld [vmem:[%s447_s1 + $0x98] sm:$0xff]  ;;  %v42_v38 = vld [vmem:[%s447_s1 + $0xa0] sm:$0xff]  ;;  %v43_v39 = vld [vmem:[%s447_s1 + $0xa8] sm:$0xff] }
   0xa   :  { %v274_v37 = vpack.c.bf16 %v41_v36, %v40_v35  ;;  %v277_v40 = vpack.c.bf16 %v43_v39, %v42_v38  ;;  %v44_v41 = vld [vmem:[%s447_s1 + $0xb0] sm:$0xff]  ;;  %v45_v42 = vld [vmem:[%s447_s1 + $0xb8] sm:$0xff]  ;;  %v20_v44 = vld [vmem:[%s448_s0] sm:$0xff] }
   0xb   :  { %287 = vmatpush3.bf16.msra.mxu1 %v286_v21  ;;  %v280_v43 = vpack.c.bf16 %v45_v42, %v44_v41  ;;  %v131_v45 = vld [vmem:[%s449_s3 + $0x20] sm:$0xff]  ;;  %v132_v46 = vld [vmem:[%s449_s3 + $0x28] sm:$0xff] }
   0xc   :  { %254 = vmatpush1.bf16.msra.mxu0 %v253_v9  ;;  %288 = vmatprep.subr.bf16.mxu1 %v294_v0  ;;  %v289_v47 = vpack.c.bf16 %v132_v46, %v131_v45  ;;  %v220_v49 = vld [vmem:[%s450_s2] ss:$0 sm:$0xff] }
   0xd   :  { %255 = vmatprep.subr.bf16.mxu0 %v294_v0  ;;  %v222_v53 = vld [vmem:[%s451_s4] ss:$0 sm:$0xff] }
   0xf   :  { %290 = vmatpush3.bf16.msra.mxu1 %v289_v47 }
  0x10   :  { %257 = vmatpush1.bf16.msra.mxu0 %v256_v18 }
  0x11   :  { %258 = vmatprep.subr.bf16.mxu0 %v294_v0 }
  0x14   :  { %260 = vmatpush1.bf16.msra.mxu0 %v259_v22 }
  0x15   :  { %261 = vmatprep.subr.bf16.mxu0 %v294_v0 }
  0x18   :  { %263 = vmatpush1.bf16.msra.mxu0 %v262_v25 }
  0x19   :  { %264 = vmatprep.subr.bf16.mxu0 %v294_v0 }
  0x1c   :  { %266 = vmatpush1.bf16.msra.mxu0 %v265_v28 }
  0x1d   :  { %267 = vmatprep.subr.bf16.mxu0 %v294_v0 }
  0x20   :  { %269 = vmatpush1.bf16.msra.mxu0 %v268_v31 }
  0x21   :  { %270 = vmatprep.subr.bf16.mxu0 %v294_v0 }
  0x24   :  { %272 = vmatpush1.bf16.msra.mxu0 %v271_v34 }
  0x25   :  { %273 = vmatprep.subr.bf16.mxu0 %v294_v0 }
  0x28   :  { %275 = vmatpush1.bf16.msra.mxu0 %v274_v37 }
  0x29   :  { %276 = vmatprep.subr.bf16.mxu0 %v294_v0 }
  0x2c   :  { %278 = vmatpush1.bf16.msra.mxu0 %v277_v40 }
  0x2d   :  { %279 = vmatprep.subr.bf16.mxu0 %v294_v0 }
  0x30   :  { %281 = vmatpush1.bf16.msra.mxu0 %v280_v43 }
  0x33   :  { %122 = vmatmul.mubr.f32.vlgmr.msra.gmra.mrb[0].mxu0 %v20_v44 }
 0x106   :  { %v123_v50 = vpop.f32.mrb[0].mxu0 }
 0x107   :  { %v124_v51 = vadd.f32 %v220_v49, %v123_v50  ;;  %v125_v52 = vpop.f32.mrb[1].mxu0 }
 0x109   :  { %244 = vmatmul.mubr.msk.f32.vlgmr.msra.gmra.mrb[0].mxu1 %vm140_vm2, %v124_v51 }
 0x1dc   :  { %v210_v54 = vpop.f32.mrb[0].mxu1 }
 0x1dd   :  { %v211_v55 = vadd.f32 %v222_v53, %v210_v54  ;;  %v245_v56 = vpop.f32.mrb[1].mxu1 }
 0x1df   :  { %215 = vst.msk [vmem:[%s452_s5] sm:$0xff] %vm214_vm3, %v211_v55 }

// kernel: _forward_jit.3
= control target key start
LH: loop header
LB: loop body
LE: loop exit
PB: predicated region body
PF: predicated region fallthrough
CT: control target
= control target key end

     0   :  { %s3572_s0 = inlined_call_operand.vmem [shape: f32[28,32], index: 0, kind: input, shape index: {}]   ;;  %s3573_s1 = inlined_call_operand.vmem [shape: f32[28,28], index: 1, kind: input, shape index: {}]   ;;  %s3574_s2 = inlined_call_operand.vmem [shape: f32[2,28], index: 2, kind: input, shape index: {}]   ;;  %s3575_s3 = inlined_call_operand.vmem [shape: f32[1,32], index: 3, kind: input, shape index: {}]   ;;  %s3576_s4 = inlined_call_operand.vmem [shape: f32[1,32], index: 4, kind: input, shape index: {}]   ;;  %s3577_s5 = inlined_call_operand.vmem [shape: f32[2,32,96], index: 5, kind: input, shape index: {}]   ;;  %s3578_s6 = inlined_call_operand.vmem [shape: f32[2,1,96], index: 6, kind: input, shape index: {}]   ;;  %s3579_s7 = inlined_call_operand.vmem [shape: f32[2,32,32], index: 7, kind: input, shape index: {}]   ;;  %s3580_s8 = inlined_call_operand.vmem [shape: f32[2,1,32], index: 8, kind: input, shape index: {}]   ;;  %s3581_s9 = inlined_call_operand.vmem [shape: f32[2,1,32], index: 9, kind: input, shape index: {}]   ;;  %s3582_s10 = inlined_call_operand.vmem [shape: f32[2,1,32], index: 10, kind: input, shape index: {}]   ;;  %s3583_s11 = inlined_call_operand.vmem [shape: f32[2,32,128], index: 11, kind: input, shape index: {}]   ;;  %s3584_s12 = inlined_call_operand.vmem [shape: f32[2,1,128], index: 12, kind: input, shape index: {}]   ;;  %s3585_s13 = inlined_call_operand.vmem [shape: f32[2,128,32], index: 13, kind: input, shape index: {}]   ;;  %s3586_s14 = inlined_call_operand.vmem [shape: f32[2,1,32], index: 14, kind: input, shape index: {}]   ;;  %s3587_s15 = inlined_call_operand.vmem [shape: f32[2,1,32], index: 15, kind: input, shape index: {}]   ;;  %s3588_s16 = inlined_call_operand.vmem [shape: f32[2,1,32], index: 16, kind: input, shape index: {}]   ;;  %s3589_s17 = inlined_call_operand.vmem [shape: f32[32,32], index: 17, kind: input, shape index: {}]   ;;  %s3590_s18 = inlined_call_operand.vmem [shape: f32[1,32], index: 18, kind: input, shape index: {}]   ;;  %s3591_s19 = inlined_call_operand.vmem [shape: f32[28,32], index: 19, kind: output, shape index: {0}]   ;;  %s3592_s20 = inlined_call_operand.hbm [shape: f32[2,32], index: 20, kind: output, shape index: {1}]  }
   0x1   :  { %3599 = sst [smem:[#allocation7_spill]] %s3572_s0 }
   0x2   :  { %3600 = sst [smem:[#allocation8_spill]] %s3573_s1 }
   0x3   :  { %3601 = sst [smem:[#allocation9_spill]] %s3574_s2 }
   0x4   :  { %3602 = sst [smem:[#allocation10_spill]] %s3575_s3 }
   0x5   :  { %3603 = sst [smem:[#allocation11_spill]] %s3576_s4 }
   0x6   :  { %3604 = sst [smem:[#allocation12_spill]] %s3577_s5 }
   0x7   :  { %3605 = sst [smem:[#allocation13_spill]] %s3579_s7 }
   0x8   :  { %3606 = sst [smem:[#allocation14_spill]] %s3589_s17 }
   0x9   :  { %3607 = sst [smem:[#allocation15_spill]] %s3590_s18 }
   0xa   :  { %3608 = sst [smem:[#allocation16_spill]] %s3591_s19 }
   0xb   :  { %3609 = sst [smem:[#allocation17_spill]] %s3592_s20 }
   0xc   :  { %26 = vsyncpa [#allocation4], 0  ;;  %s3140_s1 = smov 0  }
   0xd LB: > { %3610 = sst [smem:[#allocation6_spill]] %s3022_s1  ;;  %s3146_s22 = sadd.s32 4294967295, %s3022_s1   ;;  %s3022_s1 = sphi %s3140_s1, %s32_s1  }
   0xe   : > { %p2427_p0 = scmp.ge.s32.totalorder %s3022_s1, 1  ;;  %p650_p1 = scmp.lt.s32.totalorder %s3022_s1, 3 }
  0x10   : > { %p651_p2 = pnand %p2427_p0, %p650_p1 }
  0x11   : > { %p742_p3 = scmp.lt.s32.totalorder (!%p651_p2), %s3146_s22, 1  ;;  %s3611_s5 = sld [smem:[#allocation12_spill]] (!%p651_p2) }
  0x12   : > { %654 = sbr.rel (%p651_p2) target bundleno = 3970 (0xf82), region = 96  ;;  %s3612_s7 = sld [smem:[#allocation13_spill]] (!%p651_p2) }
  0x13   : > { %p2436_p4 = scmp.ne.s32.totalorder (!%p651_p2), %s3146_s22, 0 }
  0x19   : > { %s3152_s23 = scalar_select %p742_p3, %s3146_s22, 1 }
  0x1a   : > { %789 = sbr.rel (%p2436_p4) target bundleno = 355 (0x163), region = 100  ;;  %s3613_s0 = sld [smem:[#allocation7_spill]] (!%p2436_p4)  ;;  %vm796_vm0 = vcmask (!%p2436_p4), 261120   ;;  %vm806_vm1 = vcmask (!%p2436_p4), 257024  }
  0x1b   : > { %s2494_s24 = sshll.u32 %s3152_s23, 5  ;;  %s2497_s19 = sshll.u32 %s3152_s23, 7 }
  0x1c   : > { %s3162_s28 = scalar_lea.vmem %s3611_s5, %s2494_s24  ;;  %s3167_s30 = scalar_lea.vmem %s3612_s7, %s2494_s24 }
  0x1d   : > { %s3184_s5 = scalar_lea.vmem %s3583_s11, %s2494_s24  ;;  %s771_s7 = scalar_lea.vmem %s3584_s12, %s3152_s23 }
  0x1e   : > { %s3194_s1 = scalar_lea.vmem %s3585_s13, %s2497_s19  ;;  %s779_s2 = scalar_lea.vmem %s3586_s14, %s3152_s23 }
  0x1f   : > { %s782_s26 = scalar_lea.vmem %s3587_s15, %s3152_s23  ;;  %s785_s17 = scalar_lea.vmem %s3588_s16, %s3152_s23 }
  0x20   : > { %v790_v0 = vld [vmem:[%s3613_s0] sm:$0xff] (!%p2436_p4)  ;;  %v792_v1 = vld [vmem:[%s3613_s0 + $0x10] sm:$0xff] (!%p2436_p4)  ;;  %v791_v2 = vld [vmem:[%s3613_s0 + $0x8] sm:$0xff] (!%p2436_p4)  ;;  %s3614_s4 = sld [smem:[#allocation10_spill]] (!%p2436_p4)  ;;  %s3615_s21 = sld [smem:[#allocation11_spill]] (!%p2436_p4) }
  0x21   : > { %v797_v3 = vsel %vm796_vm0, %v790_v0, 0.0  ;;  %v803_v4 = vsel %vm796_vm0, %v792_v1, 0.0  ;;  %v793_v5 = vld [vmem:[%s3613_s0 + $0x18] sm:$0xf]  ;;  %v800_v6 = vsel %vm796_vm0, %v791_v2, 0.0 }
  0x22   : > { %798 = vadd.xlane.f32.xlu0 %v797_v3  ;;  %804 = vadd.xlane.f32.xlu1 %v803_v4  ;;  %v807_v7 = vsel %vm806_vm1, %v793_v5, 0.0 }
  0x26   : > { %801 = vadd.xlane.f32.xlu0 %v800_v6  ;;  %808 = vadd.xlane.f32.xlu1 %v807_v7  ;;  %v2437_v41 = vld [vmem:[%s3614_s4] ss:$0 sm:$0xff] }
  0x27   : > { %v2438_v43 = vld [vmem:[%s3615_s21] ss:$0 sm:$0xff] }
  0xaf   : > { %v799_v8 = vpop.xlane.xlu0 %798  ;;  %v805_v9 = vpop.xlane.xlu1 %804 }
  0xb0   : > { %v811_v10 = vmul.f32 0.03125, %v799_v8  ;;  %v813_v11 = vmul.f32 0.03125, %v805_v9 }
  0xb2   : > { %v815_v12 = vsub.f32 %v790_v0, %v811_v10  ;;  %v817_v13 = vsub.f32 %v792_v1, %v813_v11 }
  0xb3   : > { %v802_v14 = vpop.xlane.xlu0 %801  ;;  %v809_v15 = vpop.xlane.xlu1 %808 }
  0xb4   : > { %v812_v16 = vmul.f32 0.03125, %v802_v14  ;;  %v814_v17 = vmul.f32 0.03125, %v809_v15  ;;  %v819_v18 = vmul.f32 %v815_v12, %v815_v12  ;;  %v821_v19 = vmul.f32 %v817_v13, %v817_v13 }
  0xb6   : > { %v816_v20 = vsub.f32 %v791_v2, %v812_v16  ;;  %v818_v21 = vsub.f32 %v793_v5, %v814_v17  ;;  %v823_v22 = vsel %vm796_vm0, %v819_v18, 0.0  ;;  %v829_v23 = vsel %vm796_vm0, %v821_v19, 0.0 }
  0xb7   : > { %824 = vadd.xlane.f32.xlu0 %v823_v22 }
  0xb8   : > { %v820_v24 = vmul.f32 %v816_v20, %v816_v20  ;;  %v822_v25 = vmul.f32 %v818_v21, %v818_v21 }
  0xba   : > { %v826_v26 = vsel %vm796_vm0, %v820_v24, 0.0  ;;  %v832_v27 = vsel %vm806_vm1, %v822_v25, 0.0 }
  0xbb   : > { %830 = vadd.xlane.f32.xlu0 %v829_v23  ;;  %827 = vadd.xlane.f32.xlu1 %v826_v26 }
  0xbf   : > { %833 = vadd.xlane.f32.xlu1 %v832_v27 }
 0x144   : > { %v825_v28 = vpop.xlane.xlu0 %824 }
 0x145   : > { %v835_v29 = vmul.f32 0.03125, %v825_v28 }
 0x147   : > { %v839_v30 = vadd.f32 1e-12, %v835_v29 }
 0x148   : > { %v828_v31 = vpop.xlane.xlu1 %827  ;;  %v831_v32 = vpop.xlane.xlu0 %830 }
 0x149   : > { %2880 = vrsqrt.f32 %v839_v30  ;;  %v836_v33 = vmul.f32 0.03125, %v828_v31  ;;  %v837_v34 = vmul.f32 0.03125, %v831_v32 }
 0x14b   : > { %v840_v35 = vadd.f32 1e-12, %v836_v33  ;;  %v841_v36 = vadd.f32 1e-12, %v837_v34 }
 0x14c   : > { %v834_v37 = vpop.xlane.xlu1 %833 }
 0x14d   : > { %2882 = vrsqrt.f32 %v840_v35  ;;  %v838_v38 = vmul.f32 0.03125, %v834_v37 }
 0x14e   : > { %2884 = vrsqrt.f32 %v841_v36 }
 0x14f   : > { %v842_v39 = vadd.f32 1e-12, %v838_v38 }
 0x151   : > { %2886 = vrsqrt.f32 %v842_v39 }
 0x153   : > { %v2881_v40 = vpop.eup %2880 }
 0x154   : > { %v847_v42 = vmul.f32 %v2881_v40, %v815_v12 }
 0x156   : > { %v857_v44 = vmul.f32 %v2437_v41, %v847_v42 }
 0x157   : > { %v2883_v45 = vpop.eup %2882 }
 0x158   : > { %v2885_v46 = vpop.eup %2884  ;;  %v867_v47 = vadd.f32 %v2438_v43, %v857_v44  ;;  %v848_v48 = vmul.f32 %v2883_v45, %v816_v20 }
 0x159   : > { %v849_v49 = vmul.f32 %v2885_v46, %v817_v13 }
 0x15a   : > { %871 = vst.msk [vmem:[#allocation2] sm:$0xff] %vm796_vm0, %v867_v47  ;;  %v858_v50 = vmul.f32 %v2437_v41, %v848_v48 }
 0x15b   : > { %v2887_v51 = vpop.eup %2886  ;;  %v859_v52 = vmul.f32 %v2437_v41, %v849_v49 }
 0x15c   : > { %v868_v53 = vadd.f32 %v2438_v43, %v858_v50  ;;  %v850_v54 = vmul.f32 %v2887_v51, %v818_v21 }
 0x15d   : > { %v869_v55 = vadd.f32 %v2438_v43, %v859_v52 }
 0x15e   : > { %872 = vst.msk [vmem:[#allocation2 + $0x8] sm:$0xff] %vm796_vm0, %v868_v53  ;;  %v860_v56 = vmul.f32 %v2437_v41, %v850_v54 }
 0x15f   : > { %873 = vst.msk [vmem:[#allocation2 + $0x10] sm:$0xff] %vm796_vm0, %v869_v55 }
 0x160   : > { %v870_v57 = vadd.f32 %v2438_v43, %v860_v56 }
 0x162   : > { %874 = vst.msk [vmem:[#allocation2 + $0x18] sm:$0xf] %vm806_vm1, %v870_v57 }
 0x163 PF: > { %v883_v58 = vld [vmem:[%s3162_s28] sm:$0xff]  ;;  %v884_v59 = vld [vmem:[%s3162_s28 + $0x8] sm:$0xff]  ;;  %v885_v60 = vld [vmem:[%s3162_s28 + $0x10] sm:$0xff]  ;;  %vm894_vm2 = vcmask 261120   ;;  %s3616_s20 = scalar_lea.vmem %s3578_s6, %s3152_s23  ;;  %vm1004_vm3 = vcmask 130048   ;;  %s3024_s3 = smov 96  }
 0x164   : > { %v2742_v61 = vpack.c.bf16 %v884_v59, %v883_v58  ;;  %v886_v62 = vld [vmem:[%s3162_s28 + $0x18] sm:$0xff]  ;;  %v3243_v63 = vld [vmem:[#allocation2] sm:$0xff]  ;;  %vm3279_vm4 = vmpackc.low %vm1004_vm3, %vm1004_vm3  ;;  %s3619_s27 = sld [smem:[#allocation8_spill]]  ;;  %vm1114_vm5 = vcmask 228352   ;;  %vm1124_vm6 = vcmask 224256   ;;  %s3027_s25 = smov 112  }
 0x165   : > { %v2746_v0 = vpack.c.bf16 %v886_v62, %v885_v60  ;;  %2592 = vmatprep.mubr.msk.f32.mxu0 %vm894_vm2, %v3243_v63  ;;  %v3247_v1 = vld [vmem:[#allocation2 + $0x8] sm:$0xff]  ;;  %v2439_v4 = vld [vmem:[%s3616_s20] ss:$0 sm:$0xff]  ;;  %s3025_s20 = smov 64   ;;  %vm1183_vm7 = vcmask 1043456   ;;  %vm3028_vm8 = vmmov 1   ;;  %s3622_s19 = scalar_lea.vmem %s3580_s8, %s3152_s23 }
 0x166   : > { %2743 = vmatprep.subr.bf16.mxu0 %v2742_v61  ;;  %v3249_v2 = vld [vmem:[#allocation2 + $0x10] sm:$0xff]  ;;  %vm3331_vm9 = vmpackc.low %vm1183_vm7, %vm3028_vm8  ;;  %s3029_s24 = smov 48   ;;  %s3030_s4 = smov 16   ;;  %vm1693_vm10 = vcmask 257024  }
 0x167   : > { %2745 = vmatpush3.bf16.msra.mxu0 %v2742_v61  ;;  %s3623_s28 = scalar_lea.vmem %s3581_s9, %s3152_s23  ;;  %p2485_p5 = scmp.ne.s32.totalorder %s3146_s22, 1 }
 0x168   : > { %2747 = vmatprep.subr.bf16.mxu0 %v2746_v0  ;;  %vm3032_vm11 = vmmov (!%p2485_p5), 0   ;;  %vm2262_vm12 = vcmask (!%p2485_p5), 254976  }
 0x169   : > { %v3255_v3 = vld [vmem:[#allocation2 + $0x18] sm:$0xf] }
 0x16a   : > { %v3299_v25 = vld [vmem:[%s3619_s27 + $0x8] sm:$0xff]  ;;  %v3304_v29 = vld [vmem:[%s3619_s27] sm:$0xff]  ;;  %v3312_v36 = vld [vmem:[%s3619_s27 + $0x10] sm:$0xff] }
 0x16b   : > { %2749 = vmatpush3.bf16.msra.mxu0 %v2746_v0  ;;  %v3317_v38 = vld [vmem:[%s3619_s27 + $0x18] sm:$0xf] }
 0x16e   : > { %2593 = vmatmul.mubr.msk.f32.vlgmr.msra.gmra.mrb[0].mxu0 %vm894_vm2, %v3247_v1 }
 0x16f   : > { %2595 = vmatprep.mubr.msk.f32.mxu0 %vm894_vm2, %v3249_v2 }
 0x172   : > { %2596 = vmatmul.mubr.msk.f32.gmra.mrb[2].mxu0 %vm894_vm2, %v3255_v3 }
 0x241   : > { %v2594_v5 = vpop.f32.mrb[0].mxu0 }
 0x242   : > { %v3264_v6 = vadd.f32 %v2594_v5, %v2439_v4  ;;  %v973_v7 = vpop.f32.mrb[1].mxu0 }
 0x243   : > { %v974_v8 = vadd.f32 %v2439_v4, %v973_v7 }
 0x245   : > { %2606 = vmatprep.mubr.msk.f32.mxu0 %vm1004_vm3, %v974_v8  ;;  %v3268_v9 = vpack.i.bf16 %v3264_v6, %v974_v8  ;;  %v2597_v10 = vpop.f32.mrb[2].mxu0 }
 0x246   : > { %v3270_v11 = vadd.f32 %v2597_v10, %v2439_v4  ;;  %v983_v12 = vpop.f32.mrb[3].mxu0 }
 0x247   : > { %2889 = vrot.lane.b32.xlu0 %v3268_v9, %s3024_s3  ;;  %v984_v13 = vadd.f32 %v2439_v4, %v983_v12 }
 0x249   : > { %v3274_v14 = vpack.i.bf16 %v3270_v11, %v984_v13 }
 0x24b   : > { %2894 = vrot.lane.b32.xlu0 %v3274_v14, %s3024_s3  ;;  %s3026_s3 = smov 80  }
 0x2b9   : > { %v2890_v15 = vpop.permute.xlu0 %2889 }
 0x2ba   : > { %v2892_v16 = vunpack.i.h.bf16 %v2890_v15  ;;  %v2891_v17 = vunpack.i.l.bf16 %v2890_v15 }
 0x2bc   : > { %v2750_v19 = vpack.c.bf16 %v2892_v16, %v2891_v17 }
 0x2bd   : > { %v2895_v20 = vpop.permute.xlu0 %2894 }
 0x2be   : > { %2752 = vmatprep.subr.msk.bf16.mxu0 %vm3279_vm4, %v2750_v19  ;;  %v2897_v21 = vunpack.i.h.bf16 %v2895_v20  ;;  %v2896_v22 = vunpack.i.l.bf16 %v2895_v20 }
 0x2bf   : > { %2755 = vmatpush3.bf16.xpose.msk.msra.mxu0 %vm3279_vm4, %v2750_v19 }
 0x2c0   : > { %v2756_v23 = vpack.c.bf16 %v2897_v21, %v2896_v22 }
 0x2c2   : > { %2758 = vmatprep.subr.msk.bf16.mxu0 %vm3279_vm4, %v2756_v23 }
 0x2c7   : > { %2761 = vmatpush3.bf16.xpose.msk.msra.mxu0 %vm3279_vm4, %v2756_v23 }
 0x2ce   : > { %2607 = vmatmul.mubr.msk.f32.vlgmr.msra.gmra.mrb[4].mxu0 %vm1004_vm3, %v3264_v6 }
 0x2cf   : > { %2609 = vmatprep.mubr.msk.f32.mxu0 %vm1004_vm3, %v984_v13 }
 0x2d2   : > { %2610 = vmatmul.mubr.msk.f32.gmra.mrb[6].mxu0 %vm1004_vm3, %v3270_v11 }
 0x3a1   : > { %v2608_v24 = vpop.f32.mrb[4].mxu0 }
 0x3a2   : > { %v1107_v26 = vmul.f32 0.25, %v2608_v24  ;;  %v1087_v27 = vpop.f32.mrb[5].mxu0 }
 0x3a3   : > { %v1106_v28 = vmul.f32 0.25, %v1087_v27 }
 0x3a4   : > { %v1111_v30 = vadd.f32 %v1107_v26, %v3299_v25 }
 0x3a5   : > { %v2611_v31 = vpop.f32.mrb[6].mxu0  ;;  %v1110_v35 = vadd.f32 %v1106_v28, %v3304_v29 }
 0x3a6   : > { %v1109_v32 = vmul.f32 0.25, %v2611_v31  ;;  %v1097_v33 = vpop.f32.mrb[7].mxu0  ;;  %v1118_v34 = vsel %vm1114_vm5, %v1111_v30, -inf }
 0x3a7   : > { %v1108_v37 = vmul.f32 0.25, %v1097_v33  ;;  %1119 = vmax.xlane.f32.xlu1 %v1118_v34  ;;  %v1115_v40 = vsel %vm1114_vm5, %v1110_v35, -inf }
 0x3a8   : > { %v1113_v41 = vadd.f32 %v1109_v32, %v3317_v38 }
 0x3a9   : > { %v1112_v39 = vadd.f32 %v1108_v37, %v3312_v36 }
 0x3aa   : > { %v1125_v43 = vsel %vm1124_vm6, %v1113_v41, -inf }
 0x3ab   : > { %1116 = vmax.xlane.f32.xlu1 %v1115_v40  ;;  %v1121_v42 = vsel %vm1114_vm5, %v1112_v39, -inf }
 0x3ac   : > { %1122 = vmax.xlane.f32.xlu0 %v1121_v42 }
 0x3af   : > { %1126 = vmax.xlane.f32.xlu1 %v1125_v43 }
 0x3c0   : > { %2899 = vrot.lane.b32.xlu1 %v3268_v9, %s3025_s20 }
 0x3c2   : > { %2904 = vrot.lane.b32.xlu0 %v3274_v14, %s3025_s20 }
 0x3c4   : > { %2909 = vrot.lane.b32.xlu1 %v3268_v9, %s3026_s3 }
 0x3c6   : > { %1275 = vrot.lane.b32.xlu0 %v984_v13, %s3027_s25 }
 0x3c8   : > { %2914 = vrot.lane.b32.xlu1 %v3274_v14, %s3026_s3  ;;  %s3624_s3 = scalar_lea.vmem %s3582_s10, %s3152_s23 }
 0x3cc   : > { %1271 = vrot.lane.b32.xlu1 %v974_v8, %s3027_s25 }
 0x434   : > { %v1120_v44 = vpop.xlane.xlu1 %1119 }
 0x435   : > { %v1129_v45 = vsub.f32 %v1111_v30, %v1120_v44 }
 0x437   : > { %v1134_v46 = vmul.f32 1.442695, %v1129_v45 }
 0x438   : > { %v1117_v47 = vpop.xlane.xlu1 %1116 }
 0x439   : > { %2928 = vpow2.f32 %v1134_v46  ;;  %v1128_v48 = vsub.f32 %v1110_v35, %v1117_v47  ;;  %v1123_v49 = vpop.xlane.xlu0 %1122 }
 0x43a   : > { %v1130_v13 = vsub.f32 %v1112_v39, %v1123_v49 }
 0x43b   : > { %v1132_v50 = vmul.f32 1.442695, %v1128_v48 }
 0x43c   : > { %v1127_v51 = vpop.xlane.xlu1 %1126  ;;  %v1136_v16 = vmul.f32 1.442695, %v1130_v13 }
 0x43d   : > { %2930 = vpow2.f32 %v1132_v50  ;;  %v2905_v52 = vpop.permute.xlu0 %2904  ;;  %v1131_v12 = vsub.f32 %v1113_v41, %v1127_v51 }
 0x43e   : > { %v2907_v54 = vunpack.i.h.bf16 %v2905_v52  ;;  %v2906_v55 = vunpack.i.l.bf16 %v2905_v52 }
 0x43f   : > { %v1138_v15 = vmul.f32 1.442695, %v1131_v12 }
 0x440   : > { %v2900_v53 = vpop.permute.xlu1 %2899  ;;  %v2766_v0 = vpack.c.bf16 %v2907_v54, %v2906_v55 }
 0x441   : > { %v2902_v56 = vunpack.i.h.bf16 %v2900_v53  ;;  %v2901_v57 = vunpack.i.l.bf16 %v2900_v53  ;;  %2932 = vpow2.f32 %v1138_v15  ;;  %v1276_v42 = vpop.permute.xlu0 %1275 }
 0x442   : > { %2934 = vpow2.f32 %v1136_v16 }
 0x443   : > { %v2929_v58 = vpop.eup %2928  ;;  %v2762_v59 = vpack.c.bf16 %v2902_v56, %v2901_v57 }
 0x444   : > { %v2910_v60 = vpop.permute.xlu1 %2909  ;;  %v1143_v61 = vsel %vm1114_vm5, %v2929_v58, 0.0 }
 0x445   : > { %v2912_v4 = vunpack.i.h.bf16 %v2910_v60  ;;  %v2911_v5 = vunpack.i.l.bf16 %v2910_v60  ;;  %1144 = vadd.xlane.f32.xlu1 %v1143_v61  ;;  %2763 = vmatprep.subr.bf16.mxu0 %v2762_v59 }
 0x446   : > { %2765 = vmatpush3.bf16.msra.mxu0 %v2762_v59 }
 0x447   : > { %v2931_v7 = vpop.eup %2930  ;;  %2768 = vmatprep.subr.msk.bf16.mxu0 %vm3331_vm9, %v2766_v0  ;;  %v2772_v10 = vpack.c.bf16 %v2912_v4, %v2911_v5 }
 0x448   : > { %v1140_v8 = vsel %vm1114_vm5, %v2931_v7, 0.0  ;;  %v2915_v22 = vpop.permute.xlu1 %2914 }
 0x449   : > { %1141 = vadd.xlane.f32.xlu1 %v1140_v8  ;;  %v2917_v28 = vunpack.i.h.bf16 %v2915_v22  ;;  %v2916_v30 = vunpack.i.l.bf16 %v2915_v22 }
 0x44a   : > { %2771 = vmatpush3.bf16.msk.msra.mxu0 %vm3331_vm9, %v2766_v0 }
 0x44b   : > { %2774 = vmatprep.subr.msk.bf16.mxu0 %vm3279_vm4, %v2772_v10  ;;  %v2933_v17 = vpop.eup %2932  ;;  %v2778_v33 = vpack.c.bf16 %v2917_v28, %v2916_v30 }
 0x44c   : > { %v1149_v19 = vsel %vm1124_vm6, %v2933_v17, 0.0  ;;  %v2935_v20 = vpop.eup %2934  ;;  %v1272_v23 = vpop.permute.xlu1 %1271 }
 0x44d   : > { %v1146_v21 = vsel %vm1114_vm5, %v2935_v20, 0.0 }
 0x45a   : > { %1273 = vrot.lane.b32.xlu1 %v3264_v6, %s3027_s25 }
 0x47e   : > { %1150 = vadd.xlane.f32.xlu1 %v1149_v19 }
 0x482   : > { %1147 = vadd.xlane.f32.xlu1 %v1146_v21 }
 0x493   : > { %1277 = vrot.lane.b32.xlu1 %v3270_v11, %s3027_s25 }
 0x4d2   : > { %v1145_v6 = vpop.xlane.xlu1 %1144 }
 0x4d3   : > { %2936 = vrcp.f32 %v1145_v6 }
 0x4d6   : > { %v1142_v24 = vpop.xlane.xlu1 %1141 }
 0x4d7   : > { %2938 = vrcp.f32 %v1142_v24 }
 0x4da   : > { %v1274_v11 = vpop.permute.xlu1 %1273 }
 0x4dd   : > { %v2937_v26 = vpop.eup %2936 }
 0x4de   : > { %v1155_v32 = vmul.f32 %v2937_v26, %v2929_v58 }
 0x4e1   : > { %v2939_v27 = vpop.eup %2938 }
 0x4e2   : > { %v1153_v31 = vmul.f32 %v2939_v27, %v2931_v7 }
 0x4e4   : > { %2620 = vmatprep.mubr.msk.f32.mxu0 %vm1114_vm5, %v1153_v31 }
 0x4e5   : > { %2621 = vmatmul.mubr.msk.f32.vlgmr.msra.gmra.mrb[8].mxu0 %vm1114_vm5, %v1155_v32 }
 0x4e6   : > { %2777 = vmatpush3.bf16.xpose.msk.msra.mxu0 %vm3279_vm4, %v2772_v10 }
 0x4e7   : > { %2780 = vmatprep.subr.msk.bf16.mxu0 %vm3279_vm4, %v2778_v33 }
 0x4ee   : > { %2783 = vmatpush3.bf16.xpose.msk.msra.mxu0 %vm3279_vm4, %v2778_v33 }
 0x50b   : > { %v1151_v34 = vpop.xlane.xlu1 %1150 }
 0x50c   : > { %2940 = vrcp.f32 %v1151_v34 }
 0x50f   : > { %v1148_v35 = vpop.xlane.xlu1 %1147 }
 0x510   : > { %2942 = vrcp.f32 %v1148_v35 }
 0x513   : > { %v1278_v18 = vpop.permute.xlu1 %1277 }
 0x516   : > { %v2941_v37 = vpop.eup %2940 }
 0x517   : > { %v1159_v41 = vmul.f32 %v2941_v37, %v2933_v17 }
 0x51a   : > { %v2943_v39 = vpop.eup %2942 }
 0x51b   : > { %v1157_v40 = vmul.f32 %v2943_v39, %v2935_v20 }
 0x51d   : > { %2623 = vmatprep.mubr.msk.f32.mxu0 %vm1114_vm5, %v1157_v40 }
 0x51e   : > { %2624 = vmatmul.mubr.msk.f32.gmra.mrb[10].mxu0 %vm1114_vm5, %v1159_v41 }
 0x51f   : > { %2634 = vmatprep.mubr.msk.f32.mxu0 %vm1004_vm3, %v1272_v23 }
 0x522   : > { %2635 = vmatmul.mubr.msk.f32.vlgmr.msra.gmra.mrb[12].mxu0 %vm1004_vm3, %v1274_v11 }
 0x523   : > { %2637 = vmatprep.mubr.msk.f32.mxu0 %vm1004_vm3, %v1276_v42 }
 0x526   : > { %2638 = vmatmul.mubr.msk.f32.gmra.mrb[14].mxu0 %vm1004_vm3, %v1278_v18 }
 0x5b8   : > { %v3362_v43 = vpop.f32.mrb[8].mxu0 }
 0x5b9   : > { %v3364_v44 = vpop.f32.mrb[9].mxu0 }
 0x5f1   : > { %v3366_v45 = vpop.f32.mrb[10].mxu0 }
 0x5f2   : > { %v3368_v46 = vpop.f32.mrb[11].mxu0 }
 0x5f5   : > { %v2636_v47 = vpop.f32.mrb[12].mxu0 }
 0x5f6   : > { %v1389_v48 = vmul.f32 0.25, %v2636_v47  ;;  %v1369_v49 = vpop.f32.mrb[13].mxu0 }
 0x5f7   : > { %v1388_v50 = vmul.f32 0.25, %v1369_v49  ;;  %v1571_v49 = vld [vmem:[%s3167_s30 + $0x8] sm:$0xff] }
 0x5f8   : > { %v1393_v51 = vadd.f32 %v1389_v48, %v3299_v25  ;;  %v1570_v48 = vld [vmem:[%s3167_s30] sm:$0xff] }
 0x5f9   : > { %v2639_v52 = vpop.f32.mrb[14].mxu0  ;;  %v1392_v53 = vadd.f32 %v1388_v50, %v3304_v29  ;;  %v2794_v50 = vpack.c.bf16 %v1571_v49, %v1570_v48 }
 0x5fa   : > { %v1379_v54 = vpop.f32.mrb[15].mxu0  ;;  %v1399_v55 = vsel %vm1114_vm5, %v1393_v51, -inf  ;;  %v1391_v56 = vmul.f32 0.25, %v2639_v52  ;;  %v1573_v52 = vld [vmem:[%s3167_s30 + $0x18] sm:$0xff] }
 0x5fb   : > { %v1390_v57 = vmul.f32 0.25, %v1379_v54  ;;  %1400 = vmax.xlane.f32.xlu1 %v1399_v55  ;;  %v1396_v58 = vsel %vm1114_vm5, %v1392_v53, -inf }
 0x5fc   : > { %1397 = vmax.xlane.f32.xlu0 %v1396_v58  ;;  %v1395_v61 = vadd.f32 %v1391_v56, %v3317_v38 }
 0x5fd   : > { %v1394_v59 = vadd.f32 %v1390_v57, %v3312_v36 }
 0x5fe   : > { %v1405_v25 = vsel %vm1124_vm6, %v1395_v61, -inf }
 0x5ff   : > { %v1402_v60 = vsel %vm1114_vm5, %v1394_v59, -inf }
 0x600   : > { %1403 = vmax.xlane.f32.xlu0 %v1402_v60 }
 0x604   : > { %1406 = vmax.xlane.f32.xlu0 %v1405_v25 }
 0x688   : > { %v1401_v29 = vpop.xlane.xlu1 %1400 }
 0x689   : > { %v1409_v0 = vsub.f32 %v1393_v51, %v1401_v29  ;;  %v1398_v4 = vpop.xlane.xlu0 %1397  ;;  %v1572_v51 = vld [vmem:[%s3167_s30 + $0x10] sm:$0xff] }
 0x68a   : > { %v1408_v5 = vsub.f32 %v1392_v53, %v1398_v4  ;;  %v2798_v53 = vpack.c.bf16 %v1573_v52, %v1572_v51 }
 0x68b   : > { %v1414_v7 = vmul.f32 1.442695, %v1409_v0 }
 0x68c   : > { %v1412_v8 = vmul.f32 1.442695, %v1408_v5 }
 0x68d   : > { %2944 = vpow2.f32 %v1414_v7  ;;  %v1404_v10 = vpop.xlane.xlu0 %1403 }
 0x68e   : > { %2946 = vpow2.f32 %v1412_v8  ;;  %v1410_v12 = vsub.f32 %v1394_v59, %v1404_v10 }
 0x690   : > { %v1416_v13 = vmul.f32 1.442695, %v1410_v12 }
 0x691   : > { %v1407_v36 = vpop.xlane.xlu0 %1406 }
 0x692   : > { %2948 = vpow2.f32 %v1416_v13  ;;  %v1411_v15 = vsub.f32 %v1395_v61, %v1407_v36 }
 0x694   : > { %v1418_v16 = vmul.f32 1.442695, %v1411_v15 }
 0x696   : > { %2950 = vpow2.f32 %v1418_v16 }
 0x697   : > { %v2945_v38 = vpop.eup %2944 }
 0x698   : > { %v2947_v17 = vpop.eup %2946  ;;  %v1423_v19 = vsel %vm1114_vm5, %v2945_v38, 0.0 }
 0x699   : > { %1424 = vadd.xlane.f32.xlu0 %v1423_v19  ;;  %v1420_v20 = vsel %vm1114_vm5, %v2947_v17, 0.0 }
 0x69a   : > { %1421 = vadd.xlane.f32.xlu1 %v1420_v20 }
 0x69c   : > { %v2949_v21 = vpop.eup %2948 }
 0x69d   : > { %v1426_v22 = vsel %vm1114_vm5, %v2949_v21, 0.0 }
 0x69e   : > { %1427 = vadd.xlane.f32.xlu1 %v1426_v22 }
 0x6a0   : > { %v2951_v23 = vpop.eup %2950 }
 0x6a1   : > { %v1429_v6 = vsel %vm1124_vm6, %v2951_v23, 0.0 }
 0x6a2   : > { %1430 = vadd.xlane.f32.xlu0 %v1429_v6 }
 0x6af   : > { %2919 = vrot.lane.b32.xlu1 %v3268_v9, %s3029_s24 }
 0x6b8   : > { %2924 = vrot.lane.b32.xlu0 %v3274_v14, %s3029_s24  ;;  %s3626_s24 = sld [smem:[#allocation14_spill]] (!%p2485_p5) }
 0x726   : > { %v1425_v26 = vpop.xlane.xlu0 %1424 }
 0x727   : > { %v1422_v24 = vpop.xlane.xlu1 %1421 }
 0x728   : > { %2952 = vrcp.f32 %v1422_v24 }
 0x729   : > { %2954 = vrcp.f32 %v1425_v26 }
 0x72b   : > { %v1428_v27 = vpop.xlane.xlu1 %1427 }
 0x72c   : > { %2956 = vrcp.f32 %v1428_v27 }
 0x72f   : > { %v2920_v28 = vpop.permute.xlu1 %2919  ;;  %v1431_v30 = vpop.xlane.xlu0 %1430 }
 0x730   : > { %v2922_v31 = vunpack.i.h.bf16 %v2920_v28  ;;  %v2921_v32 = vunpack.i.l.bf16 %v2920_v28  ;;  %2958 = vrcp.f32 %v1431_v30 }
 0x732   : > { %v2953_v33 = vpop.eup %2952  ;;  %v2784_v11 = vpack.c.bf16 %v2922_v31, %v2921_v32 }
 0x733   : > { %v2925_v34 = vpop.permute.xlu0 %2924  ;;  %v1433_v35 = vmul.f32 %v2953_v33, %v2947_v17  ;;  %v2955_v14 = vpop.eup %2954 }
 0x734   : > { %v2927_v37 = vunpack.i.h.bf16 %v2925_v34  ;;  %v2926_v39 = vunpack.i.l.bf16 %v2925_v34  ;;  %2785 = vmatprep.subr.bf16.mxu1 %v2784_v11  ;;  %v1435_v41 = vmul.f32 %v2955_v14, %v2945_v38 }
 0x735   : > { %2787 = vmatpush3.bf16.msra.mxu1 %v2784_v11  ;;  %2648 = vmatprep.mubr.msk.f32.mxu1 %vm1114_vm5, %v1433_v35 }
 0x736   : > { %v2788_v9 = vpack.c.bf16 %v2927_v37, %v2926_v39  ;;  %v2957_v40 = vpop.eup %2956  ;;  %v1758_v39 = vld [vmem:[%s3184_s5] sm:$0xff] }
 0x737   : > { %v1437_v18 = vmul.f32 %v2957_v40, %v2949_v21  ;;  %v1760_v40 = vld [vmem:[%s3184_s5 + $0x10] sm:$0xff] }
 0x738   : > { %2790 = vmatprep.subr.msk.bf16.mxu1 %vm3331_vm9, %v2788_v9 }
 0x739   : > { %2793 = vmatpush3.bf16.msk.msra.mxu1 %vm3331_vm9, %v2788_v9  ;;  %v1759_v9 = vld [vmem:[%s3184_s5 + $0x8] sm:$0xff] }
 0x73a   : > { %v2959_v42 = vpop.eup %2958  ;;  %2795 = vmatprep.subr.bf16.mxu1 %v2794_v50  ;;  %v2802_v14 = vpack.c.bf16 %v1759_v9, %v1758_v39 }
 0x73b   : > { %v1439_v47 = vmul.f32 %v2959_v42, %v2951_v23 }
 0x73c   : > { %2649 = vmatmul.mubr.msk.f32.vlgmr.msra.gmra.mrb[0].mxu1 %vm1114_vm5, %v1435_v41  ;;  %v1761_v41 = vld [vmem:[%s3184_s5 + $0x18] sm:$0xff]  ;;  %2803 = vmatprep.subr.bf16.mxu0 %v2802_v14 }
 0x73d   : > { %2651 = vmatprep.mubr.msk.f32.mxu1 %vm1114_vm5, %v1437_v18  ;;  %2797 = vmatpush3.bf16.msra.mxu1 %v2794_v50  ;;  %v2806_v42 = vpack.c.bf16 %v1761_v41, %v1760_v40 }
 0x73e   : > { %2799 = vmatprep.subr.bf16.mxu1 %v2798_v53  ;;  %2805 = vmatpush3.bf16.msra.mxu0 %v2802_v14 }
 0x73f   : > { %2807 = vmatprep.subr.bf16.mxu0 %v2806_v42 }
 0x740   : > { %2652 = vmatmul.mubr.msk.f32.gmra.mrb[2].mxu1 %vm1114_vm5, %v1439_v47 }
 0x741   : > { %2801 = vmatpush3.bf16.msra.mxu1 %v2798_v53 }
 0x742   : > { %2809 = vmatpush3.bf16.msra.mxu0 %v2806_v42 }
 0x80f   : > { %v2650_v54 = vpop.f32.mrb[0].mxu1 }
 0x810   : > { %v1531_v55 = vpop.f32.mrb[1].mxu1 }
 0x811   : > { %1554 = vrot.lane.b32.xlu1 %v1531_v55, %s3030_s4 }
 0x813   : > { %v2653_v56 = vpop.f32.mrb[2].mxu1 }
 0x814   : > { %v1541_v57 = vpop.f32.mrb[3].mxu1 }
 0x815   : > { %1556 = vrot.lane.b32.xlu1 %v2650_v54, %s3030_s4  ;;  %1558 = vrot.lane.b32.xlu0 %v1541_v57, %s3030_s4 }
 0x819   : > { %1560 = vrot.lane.b32.xlu1 %v2653_v56, %s3030_s4 }
 0x883   : > { %v1555_v58 = vpop.permute.xlu1 %1554 }
 0x884   : > { %v1566_v59 = vsel %vm1004_vm3, %v3364_v44, %v1555_v58  ;;  %v2470_v44 = vld [vmem:[%s3622_s19] ss:$0 sm:$0xff]  ;;  %s3627_s19 = sld [smem:[#allocation9_spill]] (!%p2485_p5) }
 0x885   : > { %2662 = vmatprep.mubr.msk.f32.mxu1 %vm894_vm2, %v1566_v59  ;;  %v2475_v59 = vld [vmem:[%s3623_s28] ss:$0 sm:$0xff]  ;;  %s3628_s28 = sld [smem:[#allocation15_spill]] (!%p2485_p5) }
 0x887   : > { %v1557_v60 = vpop.permute.xlu1 %1556  ;;  %v1559_v61 = vpop.permute.xlu0 %1558 }
 0x888   : > { %v1567_v25 = vsel %vm1004_vm3, %v3362_v43, %v1557_v60  ;;  %v1568_v29 = vsel %vm1004_vm3, %v3368_v46, %v1559_v61 }
 0x889   : > { %2663 = vmatmul.mubr.msk.f32.vlgmr.msra.gmra.mrb[4].mxu1 %vm894_vm2, %v1567_v25 }
 0x88a   : > { %2665 = vmatprep.mubr.msk.f32.mxu1 %vm894_vm2, %v1568_v29  ;;  %v2476_v29 = vld [vmem:[%s3624_s3] ss:$0 sm:$0xff] }
 0x88b   : > { %v1561_v0 = vpop.permute.xlu1 %1560 }
 0x88c   : > { %v1569_v4 = vsel %vm1004_vm3, %v3366_v45, %v1561_v0 }
 0x88d   : > { %2666 = vmatmul.mubr.msk.f32.gmra.mrb[6].mxu1 %vm894_vm2, %v1569_v4 }
 0x95c   : > { %v2664_v5 = vpop.f32.mrb[4].mxu1 }
 0x95d   : > { %v1665_v43 = vadd.f32 %v2664_v5, %v2470_v44  ;;  %v1659_v7 = vpop.f32.mrb[5].mxu1 }
 0x95e   : > { %v1660_v8 = vadd.f32 %v2470_v44, %v1659_v7 }
 0x95f   : > { %v1679_v46 = vadd.f32 %v1665_v43, %v3247_v1 }
 0x960   : > { %v2667_v10 = vpop.f32.mrb[6].mxu1  ;;  %v1678_v12 = vadd.f32 %v1660_v8, %v3243_v63 }
 0x961   : > { %v1669_v13 = vpop.f32.mrb[7].mxu1  ;;  %v1687_v36 = vsel %vm894_vm2, %v1679_v46, 0.0  ;;  %v1675_v45 = vadd.f32 %v2667_v10, %v2470_v44 }
 0x962   : > { %v1670_v15 = vadd.f32 %v2470_v44, %v1669_v13  ;;  %1688 = vadd.xlane.f32.xlu1 %v1687_v36  ;;  %v1684_v16 = vsel %vm894_vm2, %v1678_v12, 0.0 }
 0x963   : > { %1685 = vadd.xlane.f32.xlu0 %v1684_v16  ;;  %v1681_v19 = vadd.f32 %v1675_v45, %v3255_v3  ;;  %v1902_v45 = vld [vmem:[%s3194_s1] sm:$0xff] }
 0x964   : > { %v1680_v38 = vadd.f32 %v1670_v15, %v3249_v2  ;;  %v1903_v15 = vld [vmem:[%s3194_s1 + $0x8] sm:$0xff] }
 0x965   : > { %v1694_v1 = vsel %vm1693_vm10, %v1681_v19, 0.0  ;;  %v2810_v16 = vpack.c.bf16 %v1903_v15, %v1902_v45 }
 0x966   : > { %v1690_v17 = vsel %vm894_vm2, %v1680_v38, 0.0 }
 0x967   : > { %1691 = vadd.xlane.f32.xlu0 %v1690_v17  ;;  %2811 = vmatprep.subr.bf16.mxu1 %v2810_v16  ;;  %v1905_v17 = vld [vmem:[%s3194_s1 + $0x18] sm:$0xff] }
 0x968   : > { %2813 = vmatpush3.bf16.msra.mxu1 %v2810_v16 }
 0x96b   : > { %1695 = vadd.xlane.f32.xlu0 %v1694_v1  ;;  %v1906_v1 = vld [vmem:[%s3194_s1 + $0x20] sm:$0xff] }
 0x9ef   : > { %v1689_v63 = vpop.xlane.xlu1 %1688 }
 0x9f0   : > { %v1699_v20 = vmul.f32 0.03125, %v1689_v63  ;;  %v1686_v21 = vpop.xlane.xlu0 %1685  ;;  %v1907_v63 = vld [vmem:[%s3194_s1 + $0x28] sm:$0xff] }
 0x9f1   : > { %v1698_v22 = vmul.f32 0.03125, %v1686_v21  ;;  %v1908_v21 = vld [vmem:[%s3194_s1 + $0x30] sm:$0xff] }
 0x9f2   : > { %v1703_v23 = vsub.f32 %v1679_v46, %v1699_v20  ;;  %v2818_v20 = vpack.c.bf16 %v1907_v63, %v1906_v1 }
 0x9f3   : > { %v1702_v6 = vsub.f32 %v1678_v12, %v1698_v22  ;;  %v1909_v22 = vld [vmem:[%s3194_s1 + $0x38] sm:$0xff] }
 0x9f4   : > { %v1692_v24 = vpop.xlane.xlu0 %1691  ;;  %v1707_v26 = vmul.f32 %v1703_v23, %v1703_v23 }
 0x9f5   : > { %v1700_v27 = vmul.f32 0.03125, %v1692_v24  ;;  %v1706_v2 = vmul.f32 %v1702_v6, %v1702_v6  ;;  %v1911_v24 = vld [vmem:[%s3194_s1 + $0x48] sm:$0xff] }
 0x9f6   : > { %v1713_v28 = vsel %vm894_vm2, %v1707_v26, 0.0 }
 0x9f7   : > { %v1704_v3 = vsub.f32 %v1680_v38, %v1700_v27  ;;  %1714 = vadd.xlane.f32.xlu0 %v1713_v28  ;;  %v1710_v30 = vsel %vm894_vm2, %v1706_v2, 0.0  ;;  %v1904_v38 = vld [vmem:[%s3194_s1 + $0x10] sm:$0xff]  ;;  %v1913_v2 = vld [vmem:[%s3194_s1 + $0x58] sm:$0xff] }
 0x9f8   : > { %1711 = vadd.xlane.f32.xlu1 %v1710_v30  ;;  %v1696_v31 = vpop.xlane.xlu0 %1695  ;;  %v1912_v27 = vld [vmem:[%s3194_s1 + $0x50] sm:$0xff]  ;;  %v1915_v30 = vld [vmem:[%s3194_s1 + $0x68] sm:$0xff] }
 0x9f9   : > { %v1701_v32 = vmul.f32 0.03125, %v1696_v31  ;;  %v1708_v33 = vmul.f32 %v1704_v3, %v1704_v3  ;;  %v2830_v28 = vpack.c.bf16 %v1913_v2, %v1912_v27 }
 0x9fb   : > { %v1705_v11 = vsub.f32 %v1681_v19, %v1701_v32  ;;  %v1716_v34 = vsel %vm894_vm2, %v1708_v33, 0.0  ;;  %v2814_v19 = vpack.c.bf16 %v1905_v17, %v1904_v38  ;;  %v1916_v32 = vld [vmem:[%s3194_s1 + $0x70] sm:$0xff]  ;;  %v1917_v33 = vld [vmem:[%s3194_s1 + $0x78] sm:$0xff] }
 0x9fc   : > { %1717 = vadd.xlane.f32.xlu1 %v1716_v34  ;;  %v2477_v34 = vld [vmem:[%s771_s7] ss:$0 sm:$0xff] }
 0x9fd   : > { %v1709_v35 = vmul.f32 %v1705_v11, %v1705_v11  ;;  %2815 = vmatprep.subr.bf16.mxu1 %v2814_v19 }
 0x9fe   : > { %2817 = vmatpush3.bf16.msra.mxu1 %v2814_v19 }
 0x9ff   : > { %v1719_v37 = vsel %vm1693_vm10, %v1709_v35, 0.0  ;;  %2819 = vmatprep.subr.bf16.mxu1 %v2818_v20 }
 0xa00   : > { %1720 = vadd.xlane.f32.xlu0 %v1719_v37 }
 0xa02   : > { %2821 = vmatpush3.bf16.msra.mxu1 %v2818_v20 }
 0xa84   : > { %v1715_v18 = vpop.xlane.xlu0 %1714 }
 0xa85   : > { %v1723_v47 = vmul.f32 0.03125, %v1715_v18  ;;  %v1712_v48 = vpop.xlane.xlu1 %1711 }
 0xa86   : > { %v1722_v49 = vmul.f32 0.03125, %v1712_v48 }
 0xa87   : > { %v1727_v50 = vadd.f32 1e-12, %v1723_v47 }
 0xa88   : > { %v1726_v51 = vadd.f32 1e-12, %v1722_v49 }
 0xa89   : > { %2960 = vrsqrt.f32 %v1727_v50  ;;  %v1718_v52 = vpop.xlane.xlu1 %1717 }
 0xa8a   : > { %2962 = vrsqrt.f32 %v1726_v51  ;;  %v1724_v53 = vmul.f32 0.03125, %v1718_v52 }
 0xa8c   : > { %v1728_v54 = vadd.f32 1e-12, %v1724_v53 }
 0xa8d   : > { %v1721_v55 = vpop.xlane.xlu0 %1720 }
 0xa8e   : > { %2964 = vrsqrt.f32 %v1728_v54  ;;  %v1725_v56 = vmul.f32 0.03125, %v1721_v55 }
 0xa90   : > { %v1729_v57 = vadd.f32 1e-12, %v1725_v56 }
 0xa92   : > { %2966 = vrsqrt.f32 %v1729_v57 }
 0xa93   : > { %v2961_v58 = vpop.eup %2960 }
 0xa94   : > { %v2963_v60 = vpop.eup %2962  ;;  %v1735_v61 = vmul.f32 %v2961_v58, %v1703_v23  ;;  %v2822_v23 = vpack.c.bf16 %v1909_v22, %v1908_v21  ;;  %v2482_v22 = vld [vmem:[%s779_s2] ss:$0 sm:$0xff] }
 0xa95   : > { %v1734_v25 = vmul.f32 %v2963_v60, %v1702_v6  ;;  %v1910_v6 = vld [vmem:[%s3194_s1 + $0x40] sm:$0xff] }
 0xa96   : > { %v1745_v0 = vmul.f32 %v2475_v59, %v1735_v61  ;;  %2823 = vmatprep.subr.bf16.mxu1 %v2822_v23  ;;  %v2826_v26 = vpack.c.bf16 %v1911_v24, %v1910_v6 }
 0xa97   : > { %v1744_v4 = vmul.f32 %v2475_v59, %v1734_v25  ;;  %2825 = vmatpush3.bf16.msra.mxu1 %v2822_v23 }
 0xa98   : > { %v2965_v44 = vpop.eup %2964  ;;  %v3441_v7 = vadd.f32 %v2476_v29, %v1745_v0  ;;  %2827 = vmatprep.subr.bf16.mxu1 %v2826_v26 }
 0xa99   : > { %v3439_v5 = vadd.f32 %v2476_v29, %v1744_v4  ;;  %v1736_v43 = vmul.f32 %v2965_v44, %v1704_v3  ;;  %v1914_v3 = vld [vmem:[%s3194_s1 + $0x60] sm:$0xff] }
 0xa9a   : > { %v2834_v31 = vpack.c.bf16 %v1915_v30, %v1914_v3 }
 0xa9b   : > { %2676 = vmatprep.mubr.msk.f32.mxu0 %vm894_vm2, %v3439_v5  ;;  %v1746_v8 = vmul.f32 %v2475_v59, %v1736_v43  ;;  %2829 = vmatpush3.bf16.msra.mxu1 %v2826_v26 }
 0xa9c   : > { %v2967_v46 = vpop.eup %2966  ;;  %2677 = vmatmul.mubr.msk.f32.vlgmr.msra.gmra.mrb[16].mxu0 %vm894_vm2, %v3441_v7  ;;  %2831 = vmatprep.subr.bf16.mxu1 %v2830_v28 }
 0xa9d   : > { %v3447_v10 = vadd.f32 %v2476_v29, %v1746_v8  ;;  %v1737_v12 = vmul.f32 %v2967_v46, %v1705_v11  ;;  %v2838_v11 = vpack.c.bf16 %v1917_v33, %v1916_v32 }
 0xa9f   : > { %2679 = vmatprep.mubr.msk.f32.mxu0 %vm894_vm2, %v3447_v10  ;;  %v1747_v13 = vmul.f32 %v2475_v59, %v1737_v12  ;;  %2833 = vmatpush3.bf16.msra.mxu1 %v2830_v28 }
 0xaa0   : > { %2835 = vmatprep.subr.bf16.mxu1 %v2834_v31 }
 0xaa1   : > { %v3451_v36 = vadd.f32 %v2476_v29, %v1747_v13 }
 0xaa3   : > { %2680 = vmatmul.mubr.msk.f32.gmra.mrb[18].mxu0 %vm894_vm2, %v3451_v36  ;;  %2837 = vmatpush3.bf16.msra.mxu1 %v2834_v31 }
 0xaa4   : > { %2839 = vmatprep.subr.bf16.mxu1 %v2838_v11 }
 0xaa7   : > { %2841 = vmatpush3.bf16.msra.mxu1 %v2838_v11 }
 0xb6f   : > { %v2678_v35 = vpop.f32.mrb[16].mxu0 }
 0xb70   : > { %v1853_v37 = vadd.f32 %v2678_v35, %v2477_v34  ;;  %v1847_v39 = vpop.f32.mrb[17].mxu0 }
 0xb71   : > { %v1848_v9 = vadd.f32 %v2477_v34, %v1847_v39 }
 0xb72   : > { %v1867_v14 = vmul.f32 %v1853_v37, %v1853_v37 }
 0xb73   : > { %v1866_v40 = vmul.f32 %v1848_v9, %v1848_v9 }
 0xb74   : > { %v1871_v41 = vmul.f32 %v1867_v14, %v1853_v37 }
 0xb75   : > { %v1870_v42 = vmul.f32 %v1866_v40, %v1848_v9 }
 0xb76   : > { %v1875_v18 = vmul.f32 0.044715, %v1871_v41  ;;  %v2681_v47 = vpop.f32.mrb[18].mxu0 }
 0xb77   : > { %v1874_v48 = vmul.f32 0.044715, %v1870_v42  ;;  %v1863_v49 = vadd.f32 %v2681_v47, %v2477_v34  ;;  %v1857_v50 = vpop.f32.mrb[19].mxu0 }
 0xb78   : > { %v1879_v51 = vadd.f32 %v1875_v18, %v1853_v37  ;;  %v1858_v52 = vadd.f32 %v2477_v34, %v1857_v50 }
 0xb79   : > { %v1878_v53 = vadd.f32 %v1874_v48, %v1848_v9  ;;  %v1869_v54 = vmul.f32 %v1863_v49, %v1863_v49 }
 0xb7a   : > { %v1883_v55 = vmul.f32 0.7978846, %v1879_v51  ;;  %v1868_v56 = vmul.f32 %v1858_v52, %v1858_v52 }
 0xb7b   : > { %v1882_v57 = vmul.f32 0.7978846, %v1878_v53  ;;  %v1873_v58 = vmul.f32 %v1869_v54, %v1863_v49 }
 0xb7c   : > { %2968 = vtanh.f32 %v1883_v55  ;;  %v1872_v59 = vmul.f32 %v1868_v56, %v1858_v52 }
 0xb7d   : > { %v1877_v60 = vmul.f32 0.044715, %v1873_v58  ;;  %2970 = vtanh.f32 %v1882_v57 }
 0xb7e   : > { %v1876_v61 = vmul.f32 0.044715, %v1872_v59 }
 0xb7f   : > { %v1881_v25 = vadd.f32 %v1877_v60, %v1863_v49 }
 0xb80   : > { %v1880_v29 = vadd.f32 %v1876_v61, %v1858_v52 }
 0xb81   : > { %v1885_v0 = vmul.f32 0.7978846, %v1881_v25 }
 0xb82   : > { %v1884_v4 = vmul.f32 0.7978846, %v1880_v29 }
 0xb83   : > { %2972 = vtanh.f32 %v1885_v0 }
 0xb84   : > { %2974 = vtanh.f32 %v1884_v4 }
 0xb86   : > { %v2969_v44 = vpop.eup %2968 }
 0xb87   : > { %v2971_v43 = vpop.eup %2970  ;;  %v1891_v8 = vadd.f32 1.0, %v2969_v44 }
 0xb88   : > { %v1890_v46 = vadd.f32 1.0, %v2971_v43 }
 0xb89   : > { %v1895_v12 = vmul.f32 0.5, %v1891_v8 }
 0xb8a   : > { %v1894_v13 = vmul.f32 0.5, %v1890_v46  ;;  %v2483_v46 = vld [vmem:[%s782_s26] ss:$0 sm:$0xff]  ;;  %s3625_s26 = sld [smem:[#allocation16_spill]] (!%p2485_p5) }
 0xb8b   : > { %v1899_v16 = vmul.f32 %v1895_v12, %v1853_v37 }
 0xb8c   : > { %v1898_v45 = vmul.f32 %v1894_v13, %v1848_v9 }
 0xb8d   : > { %v2973_v15 = vpop.eup %2972 }
 0xb8e   : > { %v2975_v38 = vpop.eup %2974  ;;  %2714 = vmatprep.mubr.f32.mxu1 %v1898_v45  ;;  %v1893_v17 = vadd.f32 1.0, %v2973_v15  ;;  %v2484_v45 = vld [vmem:[%s785_s17] ss:$0 sm:$0xff] }
 0xb8f   : > { %2715 = vmatmul.mubr.f32.vlgmr.msra.gmra.mrb[8].mxu1 %v1899_v16  ;;  %v1892_v19 = vadd.f32 1.0, %v2975_v38 }
 0xb90   : > { %v1897_v1 = vmul.f32 0.5, %v1893_v17 }
 0xb91   : > { %v1896_v63 = vmul.f32 0.5, %v1892_v19 }
 0xb92   : > { %v1901_v21 = vmul.f32 %v1897_v1, %v1863_v49 }
 0xb93   : > { %v1900_v20 = vmul.f32 %v1896_v63, %v1858_v52 }
 0xb95   : > { %2717 = vmatprep.mubr.f32.mxu1 %v1900_v20 }
 0xb96   : > { %2718 = vmatmul.mubr.f32.gmra.mrb[10].mxu1 %v1901_v21 }
 0xc62   : > { %v2716_v23 = vpop.f32.mrb[8].mxu1 }
 0xc63   : > { %v1997_v6 = vadd.f32 %v2716_v23, %v2482_v22  ;;  %v1991_v24 = vpop.f32.mrb[9].mxu1 }
 0xc64   : > { %v1992_v26 = vadd.f32 %v2482_v22, %v1991_v24 }
 0xc65   : > { %v2011_v27 = vadd.f32 %v1997_v6, %v3441_v7 }
 0xc66   : > { %v2010_v2 = vadd.f32 %v1992_v26, %v3439_v5 }
 0xc67   : > { %v2019_v28 = vsel %vm894_vm2, %v2011_v27, 0.0 }
 0xc68   : > { %2020 = vadd.xlane.f32.xlu0 %v2019_v28  ;;  %v2016_v3 = vsel %vm894_vm2, %v2010_v2, 0.0  ;;  %v3031_v28 = vmov (!%p2485_p5), 0.0|0.0  }
 0xc69   : > { %2017 = vadd.xlane.f32.xlu1 %v2016_v3  ;;  %v2719_v30 = vpop.f32.mrb[10].mxu1  ;;  %2842 = vmatprep.subr.bf16.mxu0 (!%p2485_p5), %v3031_v28 }
 0xc6a   : > { %v2007_v31 = vadd.f32 %v2719_v30, %v2482_v22  ;;  %v2001_v32 = vpop.f32.mrb[11].mxu1  ;;  %2849 = vmatprep.subr.bf16.mxu1 (!%p2485_p5), %v3031_v28  ;;  %v2179_v30 = vld [vmem:[%s3626_s24 + $0x10] sm:$0xff] (!%p2485_p5) }
 0xc6b   : > { %v2002_v33 = vadd.f32 %v2482_v22, %v2001_v32 }
 0xc6c   : > { %v2013_v11 = vadd.f32 %v2007_v31, %v3451_v36  ;;  %v2180_v31 = vld [vmem:[%s3626_s24 + $0x18] sm:$0xff] (!%p2485_p5) }
 0xc6d   : > { %v2012_v34 = vadd.f32 %v2002_v33, %v3447_v10  ;;  %v3033_v33 = vmov (!%p2485_p5), 0.0  }
 0xc6e   : > { %v2025_v35 = vsel %vm1693_vm10, %v2013_v11, 0.0  ;;  %2728 = vmatprep.mubr.msk.f32.mxu0 (!%p2485_p5), %vm3032_vm11, %v3033_v33  ;;  %2739 = vmatprep.mubr.msk.f32.mxu1 (!%p2485_p5), %vm3032_vm11, %v3033_v33 }
 0xc6f   : > { %2026 = vadd.xlane.f32.xlu0 %v2025_v35  ;;  %v2022_v7 = vsel %vm894_vm2, %v2012_v34, 0.0 }
 0xc70   : > { %2023 = vadd.xlane.f32.xlu1 %v2022_v7 }
 0xcf5   : > { %v2021_v5 = vpop.xlane.xlu0 %2020 }
 0xcf6   : > { %v2029_v37 = vmul.f32 0.03125, %v2021_v5  ;;  %v2018_v39 = vpop.xlane.xlu1 %2017  ;;  %v2488_v5 = vld [vmem:[%s3628_s28] ss:$0 sm:$0xff] (!%p2485_p5) }
 0xcf7   : > { %v2028_v9 = vmul.f32 0.03125, %v2018_v39 }
 0xcf8   : > { %v2033_v14 = vsub.f32 %v2011_v27, %v2029_v37  ;;  %v2177_v27 = vld [vmem:[%s3626_s24] sm:$0xff] (!%p2485_p5) }
 0xcf9   : > { %v2032_v40 = vsub.f32 %v2010_v2, %v2028_v9  ;;  %v2178_v2 = vld [vmem:[%s3626_s24 + $0x8] sm:$0xff] (!%p2485_p5) }
 0xcfa   : > { %v2037_v41 = vmul.f32 %v2033_v14, %v2033_v14  ;;  %v2850_v3 = vpack.c.bf16 (!%p2485_p5), %v2178_v2, %v2177_v27 }
 0xcfb   : > { %v2036_v42 = vmul.f32 %v2032_v40, %v2032_v40 }
 0xcfc   : > { %v2027_v18 = vpop.xlane.xlu0 %2026  ;;  %v2043_v47 = vsel %vm894_vm2, %v2037_v41, 0.0  ;;  %2851 = vmatpush3.bf16.msra.mxu1 (!%p2485_p5), %v2850_v3 }
 0xcfd   : > { %v2031_v36 = vmul.f32 0.03125, %v2027_v18  ;;  %v2024_v48 = vpop.xlane.xlu1 %2023  ;;  %2044 = vadd.xlane.f32.xlu0 %v2043_v47  ;;  %v2040_v10 = vsel %vm894_vm2, %v2036_v42, 0.0  ;;  %2852 = vmatprep.subr.bf16.mxu1 (!%p2485_p5), %v3031_v28 }
 0xcfe   : > { %v2030_v49 = vmul.f32 0.03125, %v2024_v48  ;;  %2041 = vadd.xlane.f32.xlu1 %v2040_v10 }
 0xcff   : > { %v2035_v50 = vsub.f32 %v2013_v11, %v2031_v36  ;;  %v2853_v11 = vpack.c.bf16 (!%p2485_p5), %v2180_v31, %v2179_v30 }
 0xd00   : > { %v2034_v51 = vsub.f32 %v2012_v34, %v2030_v49  ;;  %v2100_v34 = vld [vmem:[%s3627_s19] sm:$0x3] (!%p2485_p5) }
 0xd01   : > { %v2039_v52 = vmul.f32 %v2035_v50, %v2035_v50  ;;  %2854 = vmatpush3.bf16.msra.mxu1 (!%p2485_p5), %v2853_v11 }
 0xd02   : > { %v2038_v53 = vmul.f32 %v2034_v51, %v2034_v51 }
 0xd03   : > { %v2049_v54 = vsel %vm1693_vm10, %v2039_v52, 0.0 }
 0xd04   : > { %2050 = vadd.xlane.f32.xlu0 %v2049_v54  ;;  %v2046_v55 = vsel %vm894_vm2, %v2038_v53, 0.0 }
 0xd05   : > { %2047 = vadd.xlane.f32.xlu1 %v2046_v55 }
 0xd8a   : > { %v2045_v56 = vpop.xlane.xlu0 %2044 }
 0xd8b   : > { %v2053_v57 = vmul.f32 0.03125, %v2045_v56  ;;  %v2042_v58 = vpop.xlane.xlu1 %2041 }
 0xd8c   : > { %v2052_v59 = vmul.f32 0.03125, %v2042_v58 }
 0xd8d   : > { %v2057_v60 = vadd.f32 1e-12, %v2053_v57 }
 0xd8e   : > { %v2056_v61 = vadd.f32 1e-12, %v2052_v59 }
 0xd8f   : > { %2976 = vrsqrt.f32 %v2057_v60 }
 0xd90   : > { %2978 = vrsqrt.f32 %v2056_v61 }
 0xd91   : > { %v2051_v25 = vpop.xlane.xlu0 %2050 }
 0xd92   : > { %v2055_v29 = vmul.f32 0.03125, %v2051_v25  ;;  %v2048_v0 = vpop.xlane.xlu1 %2047 }
 0xd93   : > { %v2054_v4 = vmul.f32 0.03125, %v2048_v0 }
 0xd94   : > { %v2059_v44 = vadd.f32 1e-12, %v2055_v29 }
 0xd95   : > { %v2058_v43 = vadd.f32 1e-12, %v2054_v4 }
 0xd96   : > { %2980 = vrsqrt.f32 %v2059_v44 }
 0xd97   : > { %2982 = vrsqrt.f32 %v2058_v43 }
 0xd99   : > { %v2977_v8 = vpop.eup %2976 }
 0xd9a   : > { %v2979_v12 = vpop.eup %2978  ;;  %v2065_v13 = vmul.f32 %v2977_v8, %v2033_v14 }
 0xd9b   : > { %v2064_v15 = vmul.f32 %v2979_v12, %v2032_v40 }
 0xd9c   : > { %v2075_v16 = vmul.f32 %v2483_v46, %v2065_v13 }
 0xd9d   : > { %v2074_v38 = vmul.f32 %v2483_v46, %v2064_v15 }
 0xd9e   : > { %v2085_v17 = vadd.f32 %v2484_v45, %v2075_v16 }
 0xd9f   : > { %v2084_v19 = vadd.f32 %v2484_v45, %v2074_v38 }
 0xda0   : > { %v2981_v1 = vpop.eup %2980  ;;  %2089 = vst.msk [vmem:[#allocation2 + $0x8] sm:$0xff] %vm894_vm2, %v2085_v17  ;;  %2097 = vst.msk [vmem:[%s3625_s26 + $0x8] sm:$0xff] (!%p2485_p5), %vm894_vm2, %v2085_v17 }
 0xda1   : > { %v2983_v63 = vpop.eup %2982  ;;  %2088 = vst.msk [vmem:[#allocation2] sm:$0xff] %vm894_vm2, %v2084_v19  ;;  %v2067_v20 = vmul.f32 %v2981_v1, %v2035_v50  ;;  %2096 = vst.msk [vmem:[%s3625_s26] sm:$0xff] (!%p2485_p5), %vm894_vm2, %v2084_v19  ;;  %v2843_v26 = vpack.c.bf16 (!%p2485_p5), %v2085_v17, %v2084_v19 }
 0xda2   : > { %v2066_v21 = vmul.f32 %v2983_v63, %v2034_v51  ;;  %2095 = sbr.rel (%p2485_p5) target bundleno = 3939 (0xf63), region = 104 }
 0xda3   : > { %v2077_v22 = vmul.f32 %v2483_v46, %v2067_v20  ;;  %2844 = vmatpush3.bf16.msra.mxu0 (!%p2485_p5), %v2843_v26 }
 0xda4   : > { %v2076_v23 = vmul.f32 %v2483_v46, %v2066_v21  ;;  %2845 = vmatprep.subr.bf16.mxu0 (!%p2485_p5), %v3031_v28 }
 0xda5   : > { %v2087_v6 = vadd.f32 %v2484_v45, %v2077_v22 }
 0xda6   : > { %v2086_v24 = vadd.f32 %v2484_v45, %v2076_v23 }
 0xda7   : > { %2091 = vst.msk [vmem:[#allocation2 + $0x18] sm:$0xf] %vm1693_vm10, %v2087_v6  ;;  %2099 = vst.msk [vmem:[%s3625_s26 + $0x18] sm:$0xf] (!%p2485_p5), %vm1693_vm10, %v2087_v6 }
 0xda8   : > { %2090 = vst.msk [vmem:[#allocation2 + $0x10] sm:$0xff] %vm894_vm2, %v2086_v24  ;;  %2098 = vst.msk [vmem:[%s3625_s26 + $0x10] sm:$0xff] (!%p2485_p5), %vm894_vm2, %v2086_v24  ;;  %v2846_v32 = vpack.c.bf16 (!%p2485_p5), %v2087_v6, %v2086_v24 }
 0xdaa   : > { %2848 = vmatpush3.bf16.msk.msra.mxu0 %vm3331_vm9, %v2846_v32 }
 0xdad   : > { %2729 = vmatmul.mubr.msk.f32.vlgmr.msra.gmra.mrb[0].mxu0 %vm1114_vm5, %v2100_v34 }
 0xe80   : > { %v2173_v35 = vpop.f32.mrb[0].mxu0 }
 0xe81   : > { %v2730_v7 = vpop.f32.mrb[1].mxu0  ;;  %2740 = vmatmul.mubr.msk.f32.vlgmr.msra.gmra.mrb[0].mxu1 %vm894_vm2, %v2173_v35 }
 0xf54   : > { %v2257_v37 = vpop.f32.mrb[0].mxu1 }
 0xf55   : > { %v2258_v39 = vadd.f32 %v2488_v5, %v2257_v37  ;;  %v2741_v9 = vpop.f32.mrb[1].mxu1 }
 0xf57   : > { %2984 = vtanh.f32 %v2258_v39 }
 0xf61   : > { %v2985_v62 = vpop.eup %2984 }
 0xf62   : > { %2263 = vst.msk [vmem:[#allocation3] sm:$0x3] %vm2262_vm12, %v2985_v62 }
 0xf63 PF: > { %p2859_p6 = scmp.eq.s32.totalorder %s3146_s22, 1  ;;  %s3034_s18 = smov [#allocation3]  }
 0xf64   : > { %s2274_s20 = sshll.u32 %s3034_s18, 4  ;;  %s2275_s20 = int_to_ptr.vmem [resolvable:$true] %s2274_s20 }
 0xf65   : > { %s2986_s3 = scalar_lea.vmem %s2275_s20, 32  ;;  %p2993_p10 = scmp.lt.s32.totalorder %s2275_s20, %s2275_s20 }
 0xf66   : > { %p2987_p7 = scmp.ne.s32.totalorder %s2275_s20, %s2986_s3  ;;  %p2994_p11 = scmp.lt.s32.totalorder %s2986_s3, %s2986_s3 }
 0xf68   : > { %p2988_p8 = pnand %p2987_p7, %p2859_p6  ;;  %p2995_p12 = por %p2994_p11, %p2993_p10 }
 0xf6a   : > { %p2989_p9 = pneg %p2988_p8 }
 0xf6c   : > { %p2996_p13 = pnand %p2995_p12, %p2989_p9 }
 0xf6e   : > { %2999 = shalt.err (!%p2996_p13)
}
 0xf6f   : > { %s3629_s1 = sld [smem:[#allocation17_spill]] }
 0xf75   : > { %s3630_s2 = smov %s3629_s1  ;;  %s3000_s4 = scalar_lea.hbm %s3629_s1, 32 }
 0xf76   : > { %p3001_p0 = scmp.ne.s32.totalorder %s3630_s2, %s3000_s4  ;;  %p3006_p3 = scmp.lt.u32.totalorder %s3000_s4, %s3630_s2 }
 0xf78   : > { %p3002_p1 = pnand %p3001_p0, %p2859_p6 }
 0xf7a   : > { %p3003_p2 = pneg %p3002_p1 }
 0xf7c   : > { %p3008_p4 = pnand %p3006_p3, %p3003_p2 }
 0xf7e   : > { %3011 = shalt.err (!%p3008_p4)
}
 0xf7f   : > { %2856 = dma.vmem_to_hbm [thread:$0]  (%p2859_p6), %s2275_s20, 32, %s3630_s2, [#allocation4]  }
 0xf80   : > { %3017 = dma.done.wait (%p2859_p6), [#allocation4], 32  }
 0xf81   : > { %3019 = vsyncadd (%p2859_p6), [#allocation4], 4294967264 }
 0xf82 PF: > { %s3631_s21 = sld [smem:[#allocation6_spill]] }
 0xf88   : > { %s32_s1 = sadd.s32 1, %s3631_s21  }
 0xf89   : > { %p29_p5 = scmp.ge.s32.totalorder %s32_s1, 4  }
 0xf8b   :  { %31 = sbr.rel (!%p29_p5) target bundleno = 13 (0xd), region = 172 }
 0xf92   :  { %2290 = vsyncpa [#allocation4], 1 }
 0xf93   :  { %2292 = vsyncpa [#allocation4 + $0x1], 1 }

</bundles_post_ra>
